<compile_context>
chip_gen: v7x
topology: tpu7x:2x2x1
jax: 0.10.0
libtpu: 0.0.40
codegen_flags: <defaults>
</compile_context>

<pallas_src>
from functools import partial

import jax
import jax.numpy as jnp
from jax.experimental import pallas as pl
from jax.experimental.pallas import tpu as pltpu


# ----------------------------------------------------------------------------
# Fused kernel:  out = relu(x @ W1_eff + b1_eff) @ W2 + b2
#   x      : (TILE_B, S*N)  f32   (cast to bf16 only as MXU operand)
#   W1_eff : (S*N, H)       bf16
#   W2     : (H, OUT_PAD)   bf16
#   biases : f32, epilogue in f32
# ----------------------------------------------------------------------------
def fused_decoder_kernel(x_ref, w1_ref, b1_ref, w2_ref, b2_ref, o_ref):
    x = x_ref[...].astype(w1_ref.dtype)                       # MXU operand in bf16
    h = jnp.dot(x, w1_ref[...], preferred_element_type=jnp.float32)
    h = jnp.maximum(h + b1_ref[...], 0.0)                     # f32 bias + ReLU epilogue
    out = jnp.dot(h.astype(w2_ref.dtype), w2_ref[...],
                  preferred_element_type=jnp.float32)
    o_ref[...] = (out + b2_ref[...]).astype(o_ref.dtype)


def _round_up(x, m):
    return ((x + m - 1) // m) * m


def prepare_params(params, weight_dtype=jnp.bfloat16):
    """One-time (per-checkpoint) parameter prep: fold embed into layer-1, pad out dim, cast weights.

    params: we (N,E), be (1,E), w1 (S*E,H), b1 (1,H), w2 (H,OUT), b2 (1,OUT)  -- all (in,out) layout.
    """
    we, be, w1, b1, w2, b2 = params
    N, E = we.shape
    SE, H = w1.shape
    S = SE // E
    out_dim = w2.shape[1]

    # Fold: W1_eff[s*N+n, :] = sum_e we[n,e] * W1[s*E+e, :]   (matches row-major .view(B,-1) order)
    w1_blocks = w1.reshape(S, E, H)
    w1_eff = jnp.einsum("ne,seh->snh", we, w1_blocks).reshape(S * N, H)
    b1_eff = (b1 + jnp.tile(be[0], S) @ w1).astype(jnp.float32)          # (1, H)

    # Pad output features to a multiple of 128 for lane-dense stores.
    out_pad = _round_up(out_dim, 128)
    w2_p = jnp.pad(w2, ((0, 0), (0, out_pad - out_dim)))
    b2_p = jnp.pad(b2, ((0, 0), (0, out_pad - out_dim))).astype(jnp.float32)

    return (w1_eff.astype(weight_dtype), b1_eff,
            w2_p.astype(weight_dtype), b2_p)


@partial(jax.jit, static_argnames=("bottleneck_shape",))
def symbol_to_image_decoder(sym_b, w1_eff, b1_eff, w2_p, b2_p, bottleneck_shape=(32, 5, 5)):
    """Fused Pallas implementation of SymbolToImageDecoder.forward.

    sym_b: (B, S, N) float32 -> returns (B, 32, 5, 5) float32.
    """
    B, S, N = sym_b.shape
    SN = S * N
    H = w1_eff.shape[1]
    out_pad = w2_p.shape[1]
    out_dim = bottleneck_shape[0] * bottleneck_shape[1] * bottleneck_shape[2]

    x = sym_b.reshape(B, SN).astype(jnp.float32)       # row-major, matches torch .view(B, -1)

    # Batch tiling: sublane-aligned tile, weights stay VMEM-resident across tiles.
    tile_b = min(256, _round_up(B, 8))
    b_pad = _round_up(B, tile_b)
    if b_pad != B:
        x = jnp.pad(x, ((0, b_pad - B), (0, 0)))

    feats = pl.pallas_call(
        fused_decoder_kernel,
        out_shape=jax.ShapeDtypeStruct((b_pad, out_pad), jnp.float32),
        grid_spec=pltpu.PrefetchScalarGridSpec(
            num_scalar_prefetch=0,
            grid=(b_pad // tile_b,),
            in_specs=[
                pl.BlockSpec((tile_b, SN), lambda i: (i, 0)),    # activations: pipelined per tile
                pl.BlockSpec((SN, H), lambda i: (0, 0)),         # W1_eff: resident
                pl.BlockSpec((1, H), lambda i: (0, 0)),          # b1_eff: resident
                pl.BlockSpec((H, out_pad), lambda i: (0, 0)),    # W2: resident
                pl.BlockSpec((1, out_pad), lambda i: (0, 0)),    # b2: resident
            ],
            out_specs=pl.BlockSpec((tile_b, out_pad), lambda i: (i, 0)),
        ),
        compiler_params=pltpu.CompilerParams(
            dimension_semantics=("parallel",),                   # lets v7x shard batch tiles over 2 TCs
        ),
    )(x, w1_eff, b1_eff, w2_p, b2_p)

    return feats[:B, :out_dim].reshape(B, *bottleneck_shape)


def init_params(num_symbols=8, symbol_length=8, embed_dim=128, bottleneck_shape=(32, 5, 5)):
    """Deterministic PyTorch-Linear-style init (uniform +/- 1/sqrt(fan_in)); weights stored (in, out)."""
    hidden_in = symbol_length * embed_dim                                       # 1024
    out_dim = bottleneck_shape[0] * bottleneck_shape[1] * bottleneck_shape[2]   # 800
    key = jax.random.PRNGKey(42)
    ks = jax.random.split(key, 6)

    def u(k, shape, fan_in):
        lim = 1.0 / jnp.sqrt(jnp.float32(fan_in))
        return jax.random.uniform(k, shape, jnp.float32, -lim, lim)

    we = u(ks[0], (num_symbols, embed_dim), num_symbols)       # embed.weight^T
    be = u(ks[1], (1, embed_dim), num_symbols)                 # embed.bias
    w1 = u(ks[2], (hidden_in, hidden_in), hidden_in)           # decoder[0].weight^T
    b1 = u(ks[3], (1, hidden_in), hidden_in)                   # decoder[0].bias
    w2 = u(ks[4], (hidden_in, out_dim), hidden_in)             # decoder[2].weight^T
    b2 = u(ks[5], (1, out_dim), hidden_in)                     # decoder[2].bias
    return we, be, w1, b1, w2, b2


def reference_forward(sym_b, params, bottleneck_shape=(32, 5, 5)):
    """Pure-JAX f32 reference matching the original (unfolded) PyTorch module."""
    we, be, w1, b1, w2, b2 = params
    B = sym_b.shape[0]
    e = sym_b @ we + be[0]                         # (B, S, E)
    b = e.reshape(B, -1)                           # (B, 1024)
    h = jnp.maximum(b @ w1 + b1[0], 0.0)
    o = h @ w2 + b2[0]
    return o.reshape(B, *bottleneck_shape)


if __name__ == "__main__":
    B, S, N = 2, 8, 8
    bottleneck_shape = (32, 5, 5)

    params = init_params(num_symbols=N, symbol_length=S, embed_dim=128,
                         bottleneck_shape=bottleneck_shape)
    w1_eff, b1_eff, w2_p, b2_p = prepare_params(params)        # once per checkpoint

    sym_b = jax.random.normal(jax.random.PRNGKey(0), (B, S, N), jnp.float32)

    out = symbol_to_image_decoder(sym_b, w1_eff, b1_eff, w2_p, b2_p,
                                  bottleneck_shape=bottleneck_shape)
    out = jax.block_until_ready(out)

    ref = reference_forward(sym_b, params, bottleneck_shape)
    assert out.shape == (B, *bottleneck_shape), out.shape
    # Tolerance loosened vs the pure-f32 reference because W1_eff/W2 are stored in bf16.
    err = float(jnp.max(jnp.abs(out - ref)))
    assert jnp.allclose(out, ref, atol=2e-2, rtol=2e-2), err

    print("KERNEL_OK")
</pallas_src>

<mosaic_0001>
module attributes {stable_mosaic.version = 11 : i64} {
  func.func @fused_decoder_kernel(%arg0: i32, %arg1: memref<8x64xf32, #tpu.memory_space<vmem>>, %arg2: memref<64x1024xbf16, #tpu.memory_space<vmem>>, %arg3: memref<1x1024xf32, #tpu.memory_space<vmem>>, %arg4: memref<1024x896xbf16, #tpu.memory_space<vmem>>, %arg5: memref<1x896xf32, #tpu.memory_space<vmem>>, %arg6: memref<8x896xf32, #tpu.memory_space<vmem>>) attributes {dimension_semantics = [#tpu.dimension_semantics<parallel>], iteration_bounds = array<i64: 1>, scalar_prefetch = 0 : i64, scratch_operands = 0 : i64, tpu.core_type = #tpu.core_type<tc>, window_params = [{transform_indices = @transform_0, window_bounds = array<i64: 8, 64>}, {pipeline_mode = #tpu.pipeline_mode<synchronous>, transform_indices = @transform_1, window_bounds = array<i64: 64, 1024>}, {pipeline_mode = #tpu.pipeline_mode<synchronous>, transform_indices = @transform_2, window_bounds = array<i64: 1, 1024>}, {pipeline_mode = #tpu.pipeline_mode<synchronous>, transform_indices = @transform_3, window_bounds = array<i64: 1024, 896>}, {pipeline_mode = #tpu.pipeline_mode<synchronous>, transform_indices = @transform_4, window_bounds = array<i64: 1, 896>}, {transform_indices = @transform_5, window_bounds = array<i64: 8, 896>}]} {
    %c0 = arith.constant 0 : index
    %c0_0 = arith.constant 0 : index
    %0 = vector.load %arg1[%c0, %c0_0] : memref<8x64xf32, #tpu.memory_space<vmem>>, vector<8x64xf32>
    %1 = arith.truncf %0 : vector<8x64xf32> to vector<8x64xbf16>
    %c0_1 = arith.constant 0 : index
    %c0_2 = arith.constant 0 : index
    %2 = vector.load %arg2[%c0_1, %c0_2] : memref<64x1024xbf16, #tpu.memory_space<vmem>>, vector<64x1024xbf16>
    %cst = arith.constant dense<0.000000e+00> : vector<8x1024xf32>
    %3 = tpu.matmul %1, %2, %cst {dimension_numbers = #tpu.dot_dimension_numbers<[1], [0], [0], [1], [0, 0, 1, 1], [], []>} : vector<8x64xbf16>, vector<64x1024xbf16>, vector<8x1024xf32> -> vector<8x1024xf32>
    %c0_3 = arith.constant 0 : index
    %c0_4 = arith.constant 0 : index
    %4 = vector.load %arg3[%c0_3, %c0_4] : memref<1x1024xf32, #tpu.memory_space<vmem>>, vector<1x1024xf32>
    %5 = vector.broadcast %4 : vector<1x1024xf32> to vector<8x1024xf32>
    %6 = arith.addf %3, %5 : vector<8x1024xf32>
    %cst_5 = arith.constant 0.000000e+00 : f32
    %7 = vector.broadcast %cst_5 : f32 to vector<8x1024xf32>
    %8 = arith.maximumf %6, %7 : vector<8x1024xf32>
    %9 = arith.truncf %8 : vector<8x1024xf32> to vector<8x1024xbf16>
    %c0_6 = arith.constant 0 : index
    %c0_7 = arith.constant 0 : index
    %10 = vector.load %arg4[%c0_6, %c0_7] : memref<1024x896xbf16, #tpu.memory_space<vmem>>, vector<1024x896xbf16>
    %cst_8 = arith.constant dense<0.000000e+00> : vector<8x896xf32>
    %11 = tpu.matmul %9, %10, %cst_8 {dimension_numbers = #tpu.dot_dimension_numbers<[1], [0], [0], [1], [0, 0, 1, 1], [], []>} : vector<8x1024xbf16>, vector<1024x896xbf16>, vector<8x896xf32> -> vector<8x896xf32>
    %c0_9 = arith.constant 0 : index
    %c0_10 = arith.constant 0 : index
    %12 = vector.load %arg5[%c0_9, %c0_10] : memref<1x896xf32, #tpu.memory_space<vmem>>, vector<1x896xf32>
    %13 = vector.broadcast %12 : vector<1x896xf32> to vector<8x896xf32>
    %14 = arith.addf %11, %13 : vector<8x896xf32>
    %c0_11 = arith.constant 0 : index
    %c0_12 = arith.constant 0 : index
    %15 = vector.load %arg6[%c0_11, %c0_12] : memref<8x896xf32, #tpu.memory_space<vmem>>, vector<8x896xf32>
    tpu.vector_store %arg6[%c0_11, %c0_12], %14 {strides = array<i32>} : memref<8x896xf32, #tpu.memory_space<vmem>>, vector<8x896xf32>,
    return
  }
  func.func @transform_0(%arg0: i32) -> (i32, i32) {
    %c0_i32 = arith.constant 0 : i32
    %c0_i32_0 = arith.constant 0 : i32
    return %arg0, %c0_i32 : i32, i32
  }
  func.func @transform_1(%arg0: i32) -> (i32, i32) {
    %c0_i32 = arith.constant 0 : i32
    %c0_i32_0 = arith.constant 0 : i32
    %c0_i32_1 = arith.constant 0 : i32
    return %c0_i32, %c0_i32_0 : i32, i32
  }
  func.func @transform_2(%arg0: i32) -> (i32, i32) {
    %c0_i32 = arith.constant 0 : i32
    %c0_i32_0 = arith.constant 0 : i32
    %c0_i32_1 = arith.constant 0 : i32
    return %c0_i32, %c0_i32_0 : i32, i32
  }
  func.func @transform_3(%arg0: i32) -> (i32, i32) {
    %c0_i32 = arith.constant 0 : i32
    %c0_i32_0 = arith.constant 0 : i32
    %c0_i32_1 = arith.constant 0 : i32
    return %c0_i32, %c0_i32_0 : i32, i32
  }
  func.func @transform_4(%arg0: i32) -> (i32, i32) {
    %c0_i32 = arith.constant 0 : i32
    %c0_i32_0 = arith.constant 0 : i32
    %c0_i32_1 = arith.constant 0 : i32
    return %c0_i32, %c0_i32_0 : i32, i32
  }
  func.func @transform_5(%arg0: i32) -> (i32, i32) {
    %c0_i32 = arith.constant 0 : i32
    %c0_i32_0 = arith.constant 0 : i32
    return %arg0, %c0_i32 : i32, i32
  }
}

</mosaic_0001>

<bundles_post_ra>
// kernel: symbol_to_image_decoder.1
= control target key start
LH: loop header
LB: loop body
LE: loop exit
PB: predicated region body
PF: predicated region fallthrough
CT: control target
= control target key end

     0   :  { %10 = vsyncpa [#allocation3], 0  ;;  %s5612_s0 = inlined_call_operand.vmem [shape: f32[8,64], index: 0, kind: input, shape index: {}]   ;;  %s5613_s1 = inlined_call_operand.hbm [shape: bf16[64,1024], index: 1, kind: input, shape index: {}]   ;;  %s5614_s2 = inlined_call_operand.hbm [shape: f32[1,1024], index: 2, kind: input, shape index: {}]   ;;  %s5615_s3 = inlined_call_operand.hbm [shape: bf16[1024,896], index: 3, kind: input, shape index: {}]   ;;  %s5616_s4 = inlined_call_operand.hbm [shape: f32[1,896], index: 4, kind: input, shape index: {}]   ;;  %s5617_s5 = inlined_call_operand.vmem [shape: f32[8,896], index: 5, kind: output, shape index: {}]  }
   0x1   :  { %11 = vsyncpa [#allocation5], 0 }
   0x2   :  { %12 = vsyncpa [#allocation8], 0  ;;  %s5366_s18 = smov [#allocation4]   ;;  %s5367_s20 = smov [#allocation2]  }
   0x3   :  { %s33_s19 = sshll.u32 %s5366_s18, 4  ;;  %s20_s21 = sshll.u32 %s5367_s20, 4  ;;  %s34_s19 = int_to_ptr.vmem [resolvable:$true] %s33_s19  ;;  %s5405_s21 = int_to_ptr.vmem [resolvable:$true] %s20_s21 }
   0x4   :  { %s5272_s24 = scalar_lea.hbm %s5614_s2, 128 }
   0x5   :  { %p5273_p0 = scmp.ne.s32.totalorder %s5614_s2, %s5272_s24  ;;  %p5276_p1 = scmp.lt.u32.totalorder %s5272_s24, %s5614_s2 }
   0x7   :  { %p5278_p2 = pnand %p5276_p1, %p5273_p0 }
   0x9   :  { %5281 = shalt.err (!%p5278_p2)
}
   0xa   :  { %s5282_s29 = scalar_lea.vmem %s34_s19, 128  ;;  %p5287_p4 = scmp.lt.s32.totalorder %s34_s19, %s34_s19 }
   0xb   :  { %p5283_p3 = scmp.ne.s32.totalorder %s34_s19, %s5282_s29  ;;  %p5288_p5 = scmp.lt.s32.totalorder %s5282_s29, %s5282_s29 }
   0xd   :  { %p5289_p6 = por %p5288_p5, %p5287_p4 }
   0xf   :  { %p5290_p7 = pnand %p5289_p6, %p5283_p3 }
  0x11   :  { %5293 = shalt.err (!%p5290_p7)
}
  0x12   :  { %36 = dma.hbm_to_vmem [thread:$0]  %s5614_s2, 128, %s34_s19, [#allocation5]  }
  0x13   :  { %s5294_s9 = scalar_lea.hbm %s5613_s1, 4096 }
  0x14   :  { %p5295_p8 = scmp.ne.s32.totalorder %s5613_s1, %s5294_s9  ;;  %p5298_p9 = scmp.lt.u32.totalorder %s5294_s9, %s5613_s1 }
  0x16   :  { %p5300_p10 = pnand %p5298_p9, %p5295_p8 }
  0x18   :  { %5303 = shalt.err (!%p5300_p10)
}
  0x19   :  { %s5304_s14 = scalar_lea.vmem %s5405_s21, 4096  ;;  %p5309_p12 = scmp.lt.s32.totalorder %s5405_s21, %s5405_s21 }
  0x1a   :  { %p5305_p11 = scmp.ne.s32.totalorder %s5405_s21, %s5304_s14  ;;  %p5310_p13 = scmp.lt.s32.totalorder %s5304_s14, %s5304_s14 }
  0x1c   :  { %p5311_p0 = por %p5310_p13, %p5309_p12 }
  0x1e   :  { %p5312_p1 = pnand %p5311_p0, %p5305_p11 }
  0x20   :  { %5315 = shalt.err (!%p5312_p1)
}
  0x21   :  { %s5368_s2 = smov 512   ;;  %s5369_s15 = smov 32  }
  0x22   :  { %26 = dma.hbm_to_vmem [thread:$0]  %s5613_s1, 4096, %s5405_s21, [#allocation3], %s5368_s2, %s5368_s2, %s5369_s15  }
  0x23   :  { %s5370_s18 = smov [#allocation6]   ;;  %s5316_s23 = scalar_lea.hbm %s5615_s3, 57344 }
  0x24   :  { %s42_s19 = sshll.u32 %s5370_s18, 4  ;;  %p5317_p2 = scmp.ne.s32.totalorder %s5615_s3, %s5316_s23  ;;  %s43_s19 = int_to_ptr.vmem [resolvable:$true] %s42_s19 }
  0x25   :  { %p5320_p3 = scmp.lt.u32.totalorder %s5316_s23, %s5615_s3 }
  0x27   :  { %p5322_p4 = pnand %p5320_p3, %p5317_p2 }
  0x29   :  { %5325 = shalt.err (!%p5322_p4)
}
  0x2a   :  { %s5326_s28 = scalar_lea.vmem %s43_s19, 57344  ;;  %p5331_p6 = scmp.lt.s32.totalorder %s43_s19, %s43_s19 }
  0x2b   :  { %p5327_p5 = scmp.ne.s32.totalorder %s43_s19, %s5326_s28  ;;  %p5332_p7 = scmp.lt.s32.totalorder %s5326_s28, %s5326_s28 }
  0x2d   :  { %p5333_p8 = por %p5332_p7, %p5331_p6 }
  0x2f   :  { %p5334_p9 = pnand %p5333_p8, %p5327_p5 }
  0x31   :  { %5337 = shalt.err (!%p5334_p9)
}
  0x32   :  { %s5371_s1 = smov 448   ;;  %s5372_s21 = smov 28  }
  0x33   :  { %48 = dma.hbm_to_vmem [thread:$0]  %s5615_s3, 57344, %s43_s19, [#allocation5], %s5371_s1, %s5371_s1, %s5372_s21  }
  0x34   :  { %s5373_s6 = smov [#allocation7]   ;;  %s5338_s10 = scalar_lea.hbm %s5616_s4, 112 }
  0x35   :  { %s55_s7 = sshll.u32 %s5373_s6, 4  ;;  %p5339_p10 = scmp.ne.s32.totalorder %s5616_s4, %s5338_s10  ;;  %s56_s7 = int_to_ptr.vmem [resolvable:$true] %s55_s7 }
  0x36   :  { %p5342_p11 = scmp.lt.u32.totalorder %s5338_s10, %s5616_s4 }
  0x38   :  { %p5344_p12 = pnand %p5342_p11, %p5339_p10 }
  0x3a   :  { %5347 = shalt.err (!%p5344_p12)
}
  0x3b   :  { %s5348_s2 = scalar_lea.vmem %s56_s7, 112  ;;  %s5352_s3 = scalar_lea.vmem %s56_s7, 128 }
  0x3c   :  { %p5349_p13 = scmp.ne.s32.totalorder %s56_s7, %s5348_s2  ;;  %p5353_p0 = scmp.lt.s32.totalorder %s56_s7, %s56_s7 }
  0x3d   :  { %p5354_p1 = scmp.lt.s32.totalorder %s5352_s3, %s5348_s2 }
  0x3f   :  { %p5355_p2 = por %p5354_p1, %p5353_p0 }
  0x41   :  { %p5356_p3 = pnand %p5355_p2, %p5349_p13 }
  0x43   :  { %5359 = shalt.err (!%p5356_p3)
}
  0x44   :  { %58 = dma.hbm_to_vmem [thread:$0]  %s5616_s4, 112, %s56_s7, [#allocation8]  }
  0x45   :  { %5360 = dma.done.wait [#allocation3], 4096  }
  0x46   :  { %5361 = vsyncadd [#allocation3], 4294963200 }
  0x47   :  { %5362 = dma.done.wait [#allocation5], 57472  }
  0x48   :  { %5363 = vsyncadd [#allocation5], 4294909824 }
  0x49   :  { %5364 = dma.done.wait [#allocation8], 112  }
  0x4a   :  { %5365 = vsyncadd [#allocation8], 4294967184  ;;  %v5374_v0 = vmov 0   ;;  %v74_v1 = vld [vmem:[#allocation2] sm:$0xff]  ;;  %v75_v3 = vld [vmem:[#allocation2 + $0x8] sm:$0xff]  ;;  %vm308_vm0 = vcmask 523264  }
  0x4b   :  { %344 = vmatprep.mubr.bf16.mxu0 %v5374_v0  ;;  %385 = vmatprep.mubr.bf16.mxu1 %v5374_v0  ;;  %v78_v2 = vld [vmem:[#allocation2 + $0x20] sm:$0xff]  ;;  %v79_v5 = vld [vmem:[#allocation2 + $0x28] sm:$0xff]  ;;  %v76_v31 = vld [vmem:[#allocation2 + $0x10] sm:$0xff] }
  0x4c   :  { %v4012_v4 = vcombine.high %v74_v1, %v78_v2  ;;  %v4011_v6 = vcombine.low %v74_v1, %v78_v2  ;;  %v82_v7 = vld [vmem:[#allocation2 + $0x40] sm:$0xff]  ;;  %v4014_v9 = vcombine.high %v75_v3, %v79_v5  ;;  %v4013_v10 = vcombine.low %v75_v3, %v79_v5  ;;  %v83_v12 = vld [vmem:[#allocation2 + $0x48] sm:$0xff]  ;;  %v80_v32 = vld [vmem:[#allocation2 + $0x30] sm:$0xff] }
  0x4d   :  { %v86_v8 = vld [vmem:[#allocation2 + $0x60] sm:$0xff]  ;;  %v87_v13 = vld [vmem:[#allocation2 + $0x68] sm:$0xff]  ;;  %v77_v33 = vld [vmem:[#allocation2 + $0x18] sm:$0xff]  ;;  %v4016_v38 = vcombine.high %v76_v31, %v80_v32  ;;  %v4015_v44 = vcombine.low %v76_v31, %v80_v32 }
  0x4e   :  { %v4020_v11 = vcombine.high %v82_v7, %v86_v8  ;;  %v90_v14 = vld [vmem:[#allocation2 + $0x80] sm:$0xff]  ;;  %312 = vmatprep.subr.bf16.mxu0 %v4012_v4  ;;  %v4022_v15 = vcombine.high %v83_v12, %v87_v13  ;;  %v91_v17 = vld [vmem:[#allocation2 + $0x88] sm:$0xff]  ;;  %353 = vmatprep.subr.bf16.mxu1 %v4014_v9  ;;  %v4019_v19 = vcombine.low %v82_v7, %v86_v8  ;;  %v81_v34 = vld [vmem:[#allocation2 + $0x38] sm:$0xff] }
  0x4f   :  { %v94_v16 = vld [vmem:[#allocation2 + $0xa0] sm:$0xff]  ;;  %v95_v18 = vld [vmem:[#allocation2 + $0xa8] sm:$0xff]  ;;  %313 = vmatpush1.bf16.msra.mxu0 %v4011_v6  ;;  %354 = vmatpush1.bf16.msra.mxu1 %v4013_v10  ;;  %v4021_v20 = vcombine.low %v83_v12, %v87_v13  ;;  %v84_v39 = vld [vmem:[#allocation2 + $0x50] sm:$0xff]  ;;  %v4018_v41 = vcombine.high %v77_v33, %v81_v34  ;;  %v4017_v49 = vcombine.low %v77_v33, %v81_v34 }
  0x50   :  { %314 = vmatprep.subr.bf16.mxu0 %v4020_v11  ;;  %v4028_v21 = vcombine.high %v90_v14, %v94_v16  ;;  %355 = vmatprep.subr.bf16.mxu1 %v4022_v15  ;;  %v4030_v22 = vcombine.high %v91_v17, %v95_v18  ;;  %v98_v23 = vld [vmem:[#allocation2 + $0xc0] sm:$0xff]  ;;  %v99_v25 = vld [vmem:[#allocation2 + $0xc8] sm:$0xff]  ;;  %v4027_v27 = vcombine.low %v90_v14, %v94_v16  ;;  %v88_v40 = vld [vmem:[#allocation2 + $0x70] sm:$0xff] }
  0x51   :  { %v102_v24 = vld [vmem:[#allocation2 + $0xe0] sm:$0xff]  ;;  %v103_v26 = vld [vmem:[#allocation2 + $0xe8] sm:$0xff]  ;;  %v4029_v28 = vcombine.low %v91_v17, %v95_v18  ;;  %v85_v43 = vld [vmem:[#allocation2 + $0x58] sm:$0xff]  ;;  %v4024_v46 = vcombine.high %v84_v39, %v88_v40  ;;  %v4023_v52 = vcombine.low %v84_v39, %v88_v40 }
  0x52   :  { %v4036_v29 = vcombine.high %v98_v23, %v102_v24  ;;  %v4038_v30 = vcombine.high %v99_v25, %v103_v26  ;;  %v4035_v35 = vcombine.low %v98_v23, %v102_v24  ;;  %v72_v36 = vld [vmem:[%s5612_s0] sm:$0xff]  ;;  %v4037_v37 = vcombine.low %v99_v25, %v103_v26  ;;  %v89_v45 = vld [vmem:[#allocation2 + $0x78] sm:$0xff]  ;;  %v92_v47 = vld [vmem:[#allocation2 + $0x90] sm:$0xff] }
  0x53   :  { %315 = vmatpush1.bf16.msra.mxu0 %v4019_v19  ;;  %356 = vmatpush1.bf16.msra.mxu1 %v4021_v20  ;;  %v73_v42 = vpack.c.bf16 %v72_v36, %v72_v36  ;;  %v96_v48 = vld [vmem:[#allocation2 + $0xb0] sm:$0xff]  ;;  %v4026_v50 = vcombine.high %v85_v43, %v89_v45  ;;  %v93_v51 = vld [vmem:[#allocation2 + $0x98] sm:$0xff]  ;;  %v4025_v57 = vcombine.low %v85_v43, %v89_v45  ;;  %v4637_v3 = vld [vmem:[#allocation6 + $0x384] ss:$28 sps:$4 sm:$0xff]  }
  0x54   :  { %316 = vmatprep.subr.bf16.mxu0 %v4028_v21  ;;  %357 = vmatprep.subr.bf16.mxu1 %v4030_v22  ;;  %v97_v53 = vld [vmem:[#allocation2 + $0xb8] sm:$0xff]  ;;  %v4032_v54 = vcombine.high %v92_v47, %v96_v48  ;;  %v100_v55 = vld [vmem:[#allocation2 + $0xd0] sm:$0xff]  ;;  %v4031_v60 = vcombine.low %v92_v47, %v96_v48  ;;  %v4635_v5 = vld [vmem:[#allocation6 + $0x380] ss:$28 sps:$4 sm:$0xff]  }
  0x55   :  { %v104_v56 = vld [vmem:[#allocation2 + $0xf0] sm:$0xff]  ;;  %v4034_v58 = vcombine.high %v93_v51, %v97_v53  ;;  %v101_v59 = vld [vmem:[#allocation2 + $0xd8] sm:$0xff]  ;;  %v4033_v63 = vcombine.low %v93_v51, %v97_v53  ;;  %v4643_v6 = vld [vmem:[#allocation6 + $0x3bc] ss:$28 sps:$4 sm:$0xff]  }
  0x56   :  { %v105_v61 = vld [vmem:[#allocation2 + $0xf8] sm:$0xff]  ;;  %v4040_v62 = vcombine.high %v100_v55, %v104_v56  ;;  %v4039_v2 = vcombine.low %v100_v55, %v104_v56  ;;  %v4632_v7 = vld [vmem:[#allocation6] ss:$28 sps:$4 sm:$0xff]   ;;  %v4655_v14 = vld [vmem:[#allocation6 + $0x42c] ss:$28 sps:$4 sm:$0xff]  }
  0x57   :  { %317 = vmatpush1.bf16.msra.mxu0 %v4027_v27  ;;  %358 = vmatpush1.bf16.msra.mxu1 %v4029_v28  ;;  %v4042_v1 = vcombine.high %v101_v59, %v105_v61  ;;  %v4041_v4 = vcombine.low %v101_v59, %v105_v61  ;;  %v4640_v8 = vld [vmem:[#allocation6 + $0x3c] ss:$28 sps:$4 sm:$0xff]   ;;  %v4649_v10 = vld [vmem:[#allocation6 + $0x3f4] ss:$28 sps:$4 sm:$0xff]   ;;  %v4652_v16 = vld [vmem:[#allocation6 + $0xac] ss:$28 sps:$4 sm:$0xff]  }
  0x58   :  { %318 = vmatprep.subr.bf16.mxu0 %v4036_v29  ;;  %359 = vmatprep.subr.bf16.mxu1 %v4038_v30  ;;  %v4641_v9 = vld [vmem:[#allocation6 + $0x3b8] ss:$28 sps:$4 sm:$0xff]   ;;  %v4647_v13 = vld [vmem:[#allocation6 + $0x3f0] ss:$28 sps:$4 sm:$0xff]   ;;  %v4653_v17 = vld [vmem:[#allocation6 + $0x428] ss:$28 sps:$4 sm:$0xff]  }
  0x59   :  { %v4638_v11 = vld [vmem:[#allocation6 + $0x38] ss:$28 sps:$4 sm:$0xff]   ;;  %v4644_v15 = vld [vmem:[#allocation6 + $0x70] ss:$28 sps:$4 sm:$0xff]   ;;  %v4661_v18 = vld [vmem:[#allocation6 + $0x464] ss:$28 sps:$4 sm:$0xff]  }
  0x5a   :  { %v4646_v12 = vld [vmem:[#allocation6 + $0x74] ss:$28 sps:$4 sm:$0xff]   ;;  %v4650_v19 = vld [vmem:[#allocation6 + $0xa8] ss:$28 sps:$4 sm:$0xff]   ;;  %v4656_v21 = vld [vmem:[#allocation6 + $0xe0] ss:$28 sps:$4 sm:$0xff]  }
  0x5b   :  { %319 = vmatpush1.bf16.msra.mxu0 %v4035_v35  ;;  %360 = vmatpush1.bf16.msra.mxu1 %v4037_v37  ;;  %v4658_v20 = vld [vmem:[#allocation6 + $0xe4] ss:$28 sps:$4 sm:$0xff]   ;;  %v4667_v23 = vld [vmem:[#allocation6 + $0x49c] ss:$28 sps:$4 sm:$0xff]   ;;  %v4673_v26 = vld [vmem:[#allocation6 + $0x4d4] ss:$28 sps:$4 sm:$0xff]  }
  0x5c   :  { %394 = vmatprep.subr.bf16.mxu0 %v4016_v38  ;;  %435 = vmatprep.subr.bf16.mxu1 %v4018_v41  ;;  %v4659_v22 = vld [vmem:[#allocation6 + $0x460] ss:$28 sps:$4 sm:$0xff]   ;;  %v4665_v25 = vld [vmem:[#allocation6 + $0x498] ss:$28 sps:$4 sm:$0xff]   ;;  %v4671_v29 = vld [vmem:[#allocation6 + $0x4d0] ss:$28 sps:$4 sm:$0xff]  }
  0x5d   :  { %v4664_v24 = vld [vmem:[#allocation6 + $0x11c] ss:$28 sps:$4 sm:$0xff]   ;;  %v4670_v28 = vld [vmem:[#allocation6 + $0x154] ss:$28 sps:$4 sm:$0xff]   ;;  %v4679_v30 = vld [vmem:[#allocation6 + $0x50c] ss:$28 sps:$4 sm:$0xff]  }
  0x5e   :  { %4043 = vmatmul.mubr.msk.bf16.vlgmr.msra.gmra.mrb[0].mxu0 %vm308_vm0, %v73_v42  ;;  %4044 = vmatmul.mubr.msk.bf16.vlgmr.msra.gmra.mrb[0].mxu1 %vm308_vm0, %v73_v42  ;;  %v4662_v27 = vld [vmem:[#allocation6 + $0x118] ss:$28 sps:$4 sm:$0xff]   ;;  %v4668_v31 = vld [vmem:[#allocation6 + $0x150] ss:$28 sps:$4 sm:$0xff]   ;;  %v4677_v33 = vld [vmem:[#allocation6 + $0x508] ss:$28 sps:$4 sm:$0xff]  }
  0x5f   :  { %395 = vmatpush1.bf16.msra.mxu0 %v4015_v44  ;;  %426 = vmatprep.mubr.bf16.mxu0 %v5374_v0  ;;  %v4676_v32 = vld [vmem:[#allocation6 + $0x18c] ss:$28 sps:$4 sm:$0xff]   ;;  %v4685_v34 = vld [vmem:[#allocation6 + $0x544] ss:$28 sps:$4 sm:$0xff]   ;;  %v4691_v38 = vld [vmem:[#allocation6 + $0x57c] ss:$28 sps:$4 sm:$0xff]  }
  0x60   :  { %396 = vmatprep.subr.bf16.mxu0 %v4024_v46  ;;  %436 = vmatpush1.bf16.msra.mxu1 %v4017_v49  ;;  %v4674_v35 = vld [vmem:[#allocation6 + $0x188] ss:$28 sps:$4 sm:$0xff]   ;;  %v4683_v37 = vld [vmem:[#allocation6 + $0x540] ss:$28 sps:$4 sm:$0xff]   ;;  %v4689_v41 = vld [vmem:[#allocation6 + $0x578] ss:$28 sps:$4 sm:$0xff]  }
  0x61   :  { %467 = vmatprep.mubr.bf16.mxu1 %v5374_v0  ;;  %437 = vmatprep.subr.bf16.mxu1 %v4026_v50  ;;  %v4634_v0 = vld [vmem:[#allocation6 + $0x4] ss:$28 sps:$4 sm:$0xff]   ;;  %v4688_v40 = vld [vmem:[#allocation6 + $0x1fc] ss:$28 sps:$4 sm:$0xff]   ;;  %v4694_v44 = vld [vmem:[#allocation6 + $0x234] ss:$28 sps:$4 sm:$0xff]  }
  0x62   :  { %v4682_v36 = vld [vmem:[#allocation6 + $0x1c4] ss:$28 sps:$4 sm:$0xff]   ;;  %v4686_v43 = vld [vmem:[#allocation6 + $0x1f8] ss:$28 sps:$4 sm:$0xff]   ;;  %v4695_v45 = vld [vmem:[#allocation6 + $0x5b0] ss:$28 sps:$4 sm:$0xff]  }
  0x63   :  { %397 = vmatpush1.bf16.msra.mxu0 %v4023_v52  ;;  %v4680_v39 = vld [vmem:[#allocation6 + $0x1c0] ss:$28 sps:$4 sm:$0xff]   ;;  %v4703_v46 = vld [vmem:[#allocation6 + $0x5ec] ss:$28 sps:$4 sm:$0xff]   ;;  %v4718_v59 = vld [vmem:[#allocation6 + $0x314] ss:$28 sps:$4 sm:$0xff]  }
  0x64   :  { %398 = vmatprep.subr.bf16.mxu0 %v4032_v54  ;;  %438 = vmatpush1.bf16.msra.mxu1 %v4025_v57  ;;  %v4692_v47 = vld [vmem:[#allocation6 + $0x230] ss:$28 sps:$4 sm:$0xff]   ;;  %v4701_v49 = vld [vmem:[#allocation6 + $0x5e8] ss:$28 sps:$4 sm:$0xff]   ;;  %v4707_v53 = vld [vmem:[#allocation6 + $0x620] ss:$28 sps:$4 sm:$0xff]  }
  0x65   :  { %439 = vmatprep.subr.bf16.mxu1 %v4034_v58  ;;  %v4700_v48 = vld [vmem:[#allocation6 + $0x26c] ss:$28 sps:$4 sm:$0xff]   ;;  %v4709_v50 = vld [vmem:[#allocation6 + $0x624] ss:$28 sps:$4 sm:$0xff]   ;;  %v4715_v54 = vld [vmem:[#allocation6 + $0x65c] ss:$28 sps:$4 sm:$0xff]  }
  0x66   :  { %v4698_v51 = vld [vmem:[#allocation6 + $0x268] ss:$28 sps:$4 sm:$0xff]   ;;  %v4704_v55 = vld [vmem:[#allocation6 + $0x2a0] ss:$28 sps:$4 sm:$0xff]   ;;  %v4713_v57 = vld [vmem:[#allocation6 + $0x658] ss:$28 sps:$4 sm:$0xff]  }
  0x67   :  { %399 = vmatpush1.bf16.msra.mxu0 %v4031_v60  ;;  %v4706_v52 = vld [vmem:[#allocation6 + $0x2a4] ss:$28 sps:$4 sm:$0xff]   ;;  %v4712_v56 = vld [vmem:[#allocation6 + $0x2dc] ss:$28 sps:$4 sm:$0xff]   ;;  %v4721_v60 = vld [vmem:[#allocation6 + $0x694] ss:$28 sps:$4 sm:$0xff]  }
  0x68   :  { %400 = vmatprep.subr.bf16.mxu0 %v4040_v62  ;;  %440 = vmatpush1.bf16.msra.mxu1 %v4033_v63  ;;  %v4710_v58 = vld [vmem:[#allocation6 + $0x2d8] ss:$28 sps:$4 sm:$0xff]   ;;  %v4716_v61 = vld [vmem:[#allocation6 + $0x310] ss:$28 sps:$4 sm:$0xff]  }
  0x69   :  { %441 = vmatprep.subr.bf16.mxu1 %v4042_v1  ;;  %v4719_v62 = vld [vmem:[#allocation6 + $0x690] ss:$28 sps:$4 sm:$0xff]  }
  0x6a   :  { %v4724_v63 = vld [vmem:[#allocation6 + $0x34c] ss:$28 sps:$4 sm:$0xff]  }
  0x6b   :  { %401 = vmatpush1.bf16.msra.mxu0 %v4039_v2  ;;  %v4727_v1 = vld [vmem:[#allocation6 + $0x6cc] ss:$28 sps:$4 sm:$0xff]  }
  0x6c   :  { %3386 = vmatprep.subr.bf16.mxu0 %v4637_v3  ;;  %442 = vmatpush1.bf16.msra.mxu1 %v4041_v4  ;;  %v4722_v2 = vld [vmem:[#allocation6 + $0x348] ss:$28 sps:$4 sm:$0xff]  }
  0x6d   :  { %3345 = vmatprep.subr.bf16.mxu1 %v4634_v0  ;;  %v4725_v3 = vld [vmem:[#allocation6 + $0x6c8] ss:$28 sps:$4 sm:$0xff]  }
  0x6e   :  { %4045 = vmatmul.mubr.msk.bf16.vlgmr.msra.gmra.mrb[4].mxu0 %vm308_vm0, %v73_v42  ;;  %v4730_v4 = vld [vmem:[#allocation6 + $0x704] ss:$28 sps:$4 sm:$0xff]   ;;  %v4733_v0 = vld [vmem:[#allocation6 + $0xc] ss:$28 sps:$4 sm:$0xff]  }
  0x6f   :  { %3387 = vmatpush1.bf16.msra.mxu0 %v4635_v5  ;;  %4046 = vmatmul.mubr.msk.bf16.vlgmr.msra.gmra.mrb[4].mxu1 %vm308_vm0, %v73_v42  ;;  %v4697_v42 = vld [vmem:[#allocation6 + $0x5b4] ss:$28 sps:$4 sm:$0xff]   ;;  %v108_v5 = vlaneseq }
  0x70   :  { %3388 = vmatprep.subr.bf16.mxu0 %v4643_v6  ;;  %3346 = vmatpush1.bf16.msra.mxu1 %v4632_v7  ;;  %v5473_v7 = vld [vmem:[#allocation4] sm:$0xff] }
  0x71   :  { %3347 = vmatprep.subr.bf16.mxu1 %v4640_v8  ;;  %v5471_v6 = vshrl.u32 %v108_v5, 7  ;;  %v4761_v5 = vld [vmem:[#allocation6 + $0x120] ss:$28 sps:$4 sm:$0xff]  }
  0x73   :  { %3389 = vmatpush1.bf16.msra.mxu0 %v4641_v9  ;;  %v110_v8 = vsub.s32 0, %v5471_v6  ;;  %v114_v9 = vsub.s32 1, %v5471_v6 }
  0x74   :  { %3390 = vmatprep.subr.bf16.mxu0 %v4649_v10  ;;  %3348 = vmatpush1.bf16.msra.mxu1 %v4638_v11  ;;  %v118_v10 = vsub.s32 2, %v5471_v6  ;;  %v122_v11 = vsub.s32 3, %v5471_v6 }
  0x75   :  { %3349 = vmatprep.subr.bf16.mxu1 %v4646_v12  ;;  %v111_v12 = vrot.slane %v5473_v7, %v110_v8 }
  0x77   :  { %3391 = vmatpush1.bf16.msra.mxu0 %v4647_v13  ;;  %v119_v13 = vrot.slane %v5473_v7, %v118_v10 }
  0x78   :  { %3392 = vmatprep.subr.bf16.mxu0 %v4655_v14  ;;  %3350 = vmatpush1.bf16.msra.mxu1 %v4644_v15  ;;  %v115_v14 = vrot.slane %v5473_v7, %v114_v9  ;;  %v123_v15 = vrot.slane %v5473_v7, %v122_v11 }
  0x79   :  { %3351 = vmatprep.subr.bf16.mxu1 %v4652_v16 }
  0x7b   :  { %3393 = vmatpush1.bf16.msra.mxu0 %v4653_v17 }
  0x7c   :  { %3394 = vmatprep.subr.bf16.mxu0 %v4661_v18  ;;  %3352 = vmatpush1.bf16.msra.mxu1 %v4650_v19 }
  0x7d   :  { %3353 = vmatprep.subr.bf16.mxu1 %v4658_v20 }
  0x7f   :  { %3395 = vmatpush1.bf16.msra.mxu0 %v4659_v22 }
  0x80   :  { %3396 = vmatprep.subr.bf16.mxu0 %v4667_v23  ;;  %3354 = vmatpush1.bf16.msra.mxu1 %v4656_v21 }
  0x81   :  { %3355 = vmatprep.subr.bf16.mxu1 %v4664_v24 }
  0x83   :  { %3397 = vmatpush1.bf16.msra.mxu0 %v4665_v25 }
  0x84   :  { %3398 = vmatprep.subr.bf16.mxu0 %v4673_v26  ;;  %3356 = vmatpush1.bf16.msra.mxu1 %v4662_v27 }
  0x85   :  { %3357 = vmatprep.subr.bf16.mxu1 %v4670_v28 }
  0x87   :  { %3399 = vmatpush1.bf16.msra.mxu0 %v4671_v29 }
  0x88   :  { %3400 = vmatprep.subr.bf16.mxu0 %v4679_v30  ;;  %3358 = vmatpush1.bf16.msra.mxu1 %v4668_v31 }
  0x89   :  { %3359 = vmatprep.subr.bf16.mxu1 %v4676_v32  ;;  %v4728_v32 = vld [vmem:[#allocation6 + $0x700] ss:$28 sps:$4 sm:$0xff]  }
  0x8b   :  { %3401 = vmatpush1.bf16.msra.mxu0 %v4677_v33  ;;  %v4731_v33 = vld [vmem:[#allocation6 + $0x8] ss:$28 sps:$4 sm:$0xff]  }
  0x8c   :  { %3402 = vmatprep.subr.bf16.mxu0 %v4685_v34  ;;  %3360 = vmatpush1.bf16.msra.mxu1 %v4674_v35 }
  0x8d   :  { %3361 = vmatprep.subr.bf16.mxu1 %v4682_v36  ;;  %v4736_v36 = vld [vmem:[#allocation6 + $0x73c] ss:$28 sps:$4 sm:$0xff]  }
  0x8f   :  { %3403 = vmatpush1.bf16.msra.mxu0 %v4683_v37 }
  0x90   :  { %3404 = vmatprep.subr.bf16.mxu0 %v4691_v38  ;;  %3362 = vmatpush1.bf16.msra.mxu1 %v4680_v39  ;;  %v4737_v39 = vld [vmem:[#allocation6 + $0x40] ss:$28 sps:$4 sm:$0xff]  }
  0x91   :  { %3363 = vmatprep.subr.bf16.mxu1 %v4688_v40  ;;  %v4739_v40 = vld [vmem:[#allocation6 + $0x44] ss:$28 sps:$4 sm:$0xff]  }
  0x93   :  { %3405 = vmatpush1.bf16.msra.mxu0 %v4689_v41  ;;  %v4734_v41 = vld [vmem:[#allocation6 + $0x738] ss:$28 sps:$4 sm:$0xff]  }
  0x94   :  { %3406 = vmatprep.subr.bf16.mxu0 %v4697_v42  ;;  %3364 = vmatpush1.bf16.msra.mxu1 %v4686_v43  ;;  %v4745_v42 = vld [vmem:[#allocation6 + $0x7c] ss:$28 sps:$4 sm:$0xff]   ;;  %v130_v43 = vsub.s32 5, %v5471_v6 }
  0x95   :  { %3365 = vmatprep.subr.bf16.mxu1 %v4694_v44  ;;  %v4742_v44 = vld [vmem:[#allocation6 + $0x774] ss:$28 sps:$4 sm:$0xff]  }
  0x97   :  { %3407 = vmatpush1.bf16.msra.mxu0 %v4695_v45  ;;  %v4743_v45 = vld [vmem:[#allocation6 + $0x78] ss:$28 sps:$4 sm:$0xff]  }
  0x98   :  { %3408 = vmatprep.subr.bf16.mxu0 %v4703_v46  ;;  %3366 = vmatpush1.bf16.msra.mxu1 %v4692_v47  ;;  %v131_v46 = vrot.slane %v5473_v7, %v130_v43  ;;  %v4740_v47 = vld [vmem:[#allocation6 + $0x770] ss:$28 sps:$4 sm:$0xff]  }
  0x99   :  { %3367 = vmatprep.subr.bf16.mxu1 %v4700_v48  ;;  %v4748_v48 = vld [vmem:[#allocation6 + $0x7ac] ss:$28 sps:$4 sm:$0xff]  }
  0x9b   :  { %3409 = vmatpush1.bf16.msra.mxu0 %v4701_v49  ;;  %v4751_v49 = vld [vmem:[#allocation6 + $0xb4] ss:$28 sps:$4 sm:$0xff]  }
  0x9c   :  { %3410 = vmatprep.subr.bf16.mxu0 %v4709_v50  ;;  %3368 = vmatpush1.bf16.msra.mxu1 %v4698_v51  ;;  %v4749_v50 = vld [vmem:[#allocation6 + $0xb0] ss:$28 sps:$4 sm:$0xff]  }
  0x9d   :  { %3369 = vmatprep.subr.bf16.mxu1 %v4706_v52  ;;  %v4746_v52 = vld [vmem:[#allocation6 + $0x7a8] ss:$28 sps:$4 sm:$0xff]  }
  0x9f   :  { %3411 = vmatpush1.bf16.msra.mxu0 %v4707_v53 }
  0xa0   :  { %3412 = vmatprep.subr.bf16.mxu0 %v4715_v54  ;;  %3370 = vmatpush1.bf16.msra.mxu1 %v4704_v55 }
  0xa1   :  { %3371 = vmatprep.subr.bf16.mxu1 %v4712_v56 }
  0xa3   :  { %3413 = vmatpush1.bf16.msra.mxu0 %v4713_v57  ;;  %v4757_v57 = vld [vmem:[#allocation6 + $0xec] ss:$28 sps:$4 sm:$0xff]  }
  0xa4   :  { %3372 = vmatpush1.bf16.msra.mxu1 %v4710_v58  ;;  %3414 = vmatprep.subr.bf16.mxu0 %v4721_v60  ;;  %v4754_v60 = vld [vmem:[#allocation6 + $0x7e4] ss:$28 sps:$4 sm:$0xff]  }
  0xa5   :  { %3373 = vmatprep.subr.bf16.mxu1 %v4718_v59 }
  0xa7   :  { %3415 = vmatpush1.bf16.msra.mxu0 %v4719_v62 }
  0xa8   :  { %3374 = vmatpush1.bf16.msra.mxu1 %v4716_v61  ;;  %3416 = vmatprep.subr.bf16.mxu0 %v4727_v1  ;;  %v4755_v1 = vld [vmem:[#allocation6 + $0xe8] ss:$28 sps:$4 sm:$0xff]  }
  0xa9   :  { %3375 = vmatprep.subr.bf16.mxu1 %v4724_v63 }
  0xab   :  { %3417 = vmatpush1.bf16.msra.mxu0 %v4725_v3  ;;  %v4752_v3 = vld [vmem:[#allocation6 + $0x7e0] ss:$28 sps:$4 sm:$0xff]  }
  0xac   :  { %3376 = vmatpush1.bf16.msra.mxu1 %v4722_v2  ;;  %3427 = vmatprep.subr.bf16.mxu0 %v4730_v4  ;;  %v4763_v4 = vld [vmem:[#allocation6 + $0x124] ss:$28 sps:$4 sm:$0xff]  }
  0xad   :  { %3509 = vmatprep.subr.bf16.mxu1 %v4733_v0  ;;  %v4760_v0 = vld [vmem:[#allocation6 + $0x81c] ss:$28 sps:$4 sm:$0xff]  }
 0x131   :  { %v346_v16 = vpop.f32.mrb[0].mxu0  ;;  %v387_v18 = vpop.f32.mrb[0].mxu1 }
 0x132   :  { %v347_v17 = vadd.f32 %v346_v16, %v111_v12  ;;  %v348_v19 = vpop.f32.mrb[1].mxu0  ;;  %v388_v20 = vadd.f32 %v387_v18, %v119_v13  ;;  %v389_v22 = vpop.f32.mrb[1].mxu1  ;;  %v4758_v12 = vld [vmem:[#allocation6 + $0x818] ss:$28 sps:$4 sm:$0xff]   ;;  %v4764_v16 = vld [vmem:[#allocation6 + $0x850] ss:$28 sps:$4 sm:$0xff]  }
 0x133   :  { %v349_v21 = vadd.f32 %v348_v19, %v115_v14  ;;  %v350_v23 = vpop.f32.mrb[2].mxu0  ;;  %v390_v25 = vadd.f32 %v389_v22, %v123_v15  ;;  %v391_v26 = vpop.f32.mrb[2].mxu1  ;;  %v4769_v13 = vld [vmem:[#allocation6 + $0x15c] ss:$28 sps:$4 sm:$0xff]   ;;  %v4766_v14 = vld [vmem:[#allocation6 + $0x854] ss:$28 sps:$4 sm:$0xff]  }
 0x134   :  { %v476_v24 = vmax.f32 %v347_v17, 0.0  ;;  %v351_v27 = vpop.f32.mrb[3].mxu0  ;;  %v478_v28 = vmax.f32 %v388_v20, 0.0  ;;  %v392_v30 = vpop.f32.mrb[3].mxu1  ;;  %v4767_v15 = vld [vmem:[#allocation6 + $0x158] ss:$28 sps:$4 sm:$0xff]  }
 0x135   :  { %v477_v29 = vmax.f32 %v349_v21, 0.0  ;;  %v479_v31 = vmax.f32 %v390_v25, 0.0  ;;  %v4775_v17 = vld [vmem:[#allocation6 + $0x194] ss:$28 sps:$4 sm:$0xff]   ;;  %v4772_v18 = vld [vmem:[#allocation6 + $0x88c] ss:$28 sps:$4 sm:$0xff]  }
 0x136   :  { %v5491_v34 = vpack.c.bf16 %v478_v28, %v478_v28  ;;  %v5495_v37 = vpack.c.bf16 %v476_v24, %v476_v24  ;;  %v4773_v19 = vld [vmem:[#allocation6 + $0x190] ss:$28 sps:$4 sm:$0xff]   ;;  %v4770_v20 = vld [vmem:[#allocation6 + $0x888] ss:$28 sps:$4 sm:$0xff]   ;;  %v4776_v24 = vld [vmem:[#allocation6 + $0x8c0] ss:$28 sps:$4 sm:$0xff]  }
 0x137   :  { %v5493_v35 = vpack.c.bf16 %v477_v29, %v477_v29  ;;  %v5497_v38 = vpack.c.bf16 %v479_v31, %v479_v31  ;;  %v4781_v21 = vld [vmem:[#allocation6 + $0x1cc] ss:$28 sps:$4 sm:$0xff]   ;;  %v4778_v22 = vld [vmem:[#allocation6 + $0x8c4] ss:$28 sps:$4 sm:$0xff]   ;;  %v4784_v26 = vld [vmem:[#allocation6 + $0x8fc] ss:$28 sps:$4 sm:$0xff]  }
 0x138   :  { %v4779_v23 = vld [vmem:[#allocation6 + $0x1c8] ss:$28 sps:$4 sm:$0xff]   ;;  %v4785_v27 = vld [vmem:[#allocation6 + $0x200] ss:$28 sps:$4 sm:$0xff]   ;;  %v4782_v28 = vld [vmem:[#allocation6 + $0x8f8] ss:$28 sps:$4 sm:$0xff]  }
 0x139   :  { %3377 = vmatprep.mubr.bf16.mxu1 %v5493_v35  ;;  %3418 = vmatprep.mubr.bf16.mxu0 %v5497_v38  ;;  %v4787_v25 = vld [vmem:[#allocation6 + $0x204] ss:$28 sps:$4 sm:$0xff]   ;;  %v4793_v29 = vld [vmem:[#allocation6 + $0x23c] ss:$28 sps:$4 sm:$0xff]   ;;  %v4790_v30 = vld [vmem:[#allocation6 + $0x934] ss:$28 sps:$4 sm:$0xff]  }
 0x13a   :  { %3378 = vmatmul.mubr.bf16.vlgmr.msra.gmra.mrb[8].mxu1 %v5495_v37  ;;  %3419 = vmatmul.mubr.bf16.vlgmr.msra.gmra.mrb[8].mxu0 %v5491_v34  ;;  %v4791_v31 = vld [vmem:[#allocation6 + $0x238] ss:$28 sps:$4 sm:$0xff]  }
 0x13b   :  { %3510 = vmatpush1.bf16.msra.mxu1 %v4731_v33  ;;  %3428 = vmatpush1.bf16.msra.mxu0 %v4728_v32  ;;  %v4788_v32 = vld [vmem:[#allocation6 + $0x930] ss:$28 sps:$4 sm:$0xff]  }
 0x13c   :  { %3541 = vmatprep.mubr.bf16.mxu1 %v5493_v35  ;;  %3429 = vmatprep.subr.bf16.mxu0 %v4736_v36  ;;  %v4799_v33 = vld [vmem:[#allocation6 + $0x274] ss:$28 sps:$4 sm:$0xff]   ;;  %v4796_v36 = vld [vmem:[#allocation6 + $0x96c] ss:$28 sps:$4 sm:$0xff]  }
 0x13d   :  { %3511 = vmatprep.subr.bf16.mxu1 %v4739_v40  ;;  %v4794_v40 = vld [vmem:[#allocation6 + $0x968] ss:$28 sps:$4 sm:$0xff]  }
 0x13f   :  { %3512 = vmatpush1.bf16.msra.mxu1 %v4737_v39  ;;  %3430 = vmatpush1.bf16.msra.mxu0 %v4734_v41  ;;  %v4797_v39 = vld [vmem:[#allocation6 + $0x270] ss:$28 sps:$4 sm:$0xff]  }
 0x140   :  { %3513 = vmatprep.subr.bf16.mxu1 %v4745_v42  ;;  %3431 = vmatprep.subr.bf16.mxu0 %v4742_v44  ;;  %v4805_v41 = vld [vmem:[#allocation6 + $0x2ac] ss:$28 sps:$4 sm:$0xff]   ;;  %v4802_v42 = vld [vmem:[#allocation6 + $0x9a4] ss:$28 sps:$4 sm:$0xff]  }
 0x141   :  { %v5508_v51 = vpop.f32.mrb[4].mxu0  ;;  %v4803_v44 = vld [vmem:[#allocation6 + $0x2a8] ss:$28 sps:$4 sm:$0xff]  }
 0x142   :  { %v430_v53 = vpop.f32.mrb[5].mxu0  ;;  %v5510_v56 = vpop.f32.mrb[4].mxu1 }
 0x143   :  { %3514 = vmatpush1.bf16.msra.mxu1 %v4743_v45  ;;  %v431_v54 = vadd.f32 %v430_v53, %v131_v46  ;;  %v432_v55 = vpop.f32.mrb[6].mxu0  ;;  %3432 = vmatpush1.bf16.msra.mxu0 %v4740_v47  ;;  %v5512_v59 = vpop.f32.mrb[5].mxu1  ;;  %v126_v45 = vsub.s32 4, %v5471_v6  ;;  %v4800_v46 = vld [vmem:[#allocation6 + $0x9a0] ss:$28 sps:$4 sm:$0xff]  }
 0x144   :  { %3515 = vmatprep.subr.bf16.mxu1 %v4751_v49  ;;  %v433_v58 = vpop.f32.mrb[7].mxu0  ;;  %3433 = vmatprep.subr.bf16.mxu0 %v4748_v48  ;;  %v473_v62 = vpop.f32.mrb[6].mxu1  ;;  %v4811_v47 = vld [vmem:[#allocation6 + $0x2e4] ss:$28 sps:$4 sm:$0xff]   ;;  %v4808_v48 = vld [vmem:[#allocation6 + $0x9dc] ss:$28 sps:$4 sm:$0xff]  }
 0x145   :  { %v481_v61 = vmax.f32 %v431_v54, 0.0  ;;  %v474_v63 = vpop.f32.mrb[7].mxu1  ;;  %v138_v49 = vsub.s32 7, %v5471_v6  ;;  %v4806_v53 = vld [vmem:[#allocation6 + $0x9d8] ss:$28 sps:$4 sm:$0xff]  }
 0x146   :  { %v4817_v54 = vld [vmem:[#allocation6 + $0x31c] ss:$28 sps:$4 sm:$0xff]   ;;  %v4814_v55 = vld [vmem:[#allocation6 + $0xa14] ss:$28 sps:$4 sm:$0xff]   ;;  %v4820_v63 = vld [vmem:[#allocation6 + $0xa4c] ss:$28 sps:$4 sm:$0xff]  }
 0x147   :  { %3516 = vmatpush1.bf16.msra.mxu1 %v4749_v50  ;;  %v5514_v2 = vpack.c.bf16 %v481_v61, %v481_v61  ;;  %3434 = vmatpush1.bf16.msra.mxu0 %v4746_v52  ;;  %v4809_v50 = vld [vmem:[#allocation6 + $0x2e0] ss:$28 sps:$4 sm:$0xff]   ;;  %v127_v52 = vrot.slane %v5473_v7, %v126_v45  ;;  %v4812_v61 = vld [vmem:[#allocation6 + $0xa10] ss:$28 sps:$4 sm:$0xff]  }
 0x148   :  { %3517 = vmatprep.subr.bf16.mxu1 %v4757_v57  ;;  %3435 = vmatprep.subr.bf16.mxu0 %v4754_v60  ;;  %v139_v57 = vrot.slane %v5473_v7, %v138_v49  ;;  %v4815_v60 = vld [vmem:[#allocation6 + $0x318] ss:$28 sps:$4 sm:$0xff]   ;;  %v4866_v49 = vld [vmem:[#allocation6 + $0xc08] ss:$28 sps:$4 sm:$0xff]  }
 0x149   :  { %3459 = vmatprep.mubr.bf16.mxu0 %v5514_v2  ;;  %v429_v58 = vadd.f32 %v5508_v51, %v127_v52  ;;  %v4823_v62 = vld [vmem:[#allocation6 + $0x354] ss:$28 sps:$4 sm:$0xff]   ;;  %v4874_v52 = vld [vmem:[#allocation6 + $0xc44] ss:$28 sps:$4 sm:$0xff]  }
 0x14b   :  { %3518 = vmatpush1.bf16.msra.mxu1 %v4755_v1  ;;  %3436 = vmatpush1.bf16.msra.mxu0 %v4752_v3  ;;  %v472_v1 = vadd.f32 %v5512_v59, %v139_v57  ;;  %v480_v3 = vmax.f32 %v429_v58, 0.0  ;;  %v4835_v59 = vld [vmem:[#allocation6 + $0x3c4] ss:$28 sps:$4 sm:$0xff]   ;;  %v4880_v57 = vld [vmem:[#allocation6 + $0xc7c] ss:$28 sps:$4 sm:$0xff]  }
 0x14c   :  { %3519 = vmatprep.subr.bf16.mxu1 %v4763_v4  ;;  %3437 = vmatprep.subr.bf16.mxu0 %v4760_v0  ;;  %v4821_v4 = vld [vmem:[#allocation6 + $0x350] ss:$28 sps:$4 sm:$0xff]   ;;  %v4818_v0 = vld [vmem:[#allocation6 + $0xa48] ss:$28 sps:$4 sm:$0xff]   ;;  %v4881_v58 = vld [vmem:[#allocation6 + $0x580] ss:$28 sps:$4 sm:$0xff]  }
 0x14d   :  { %v5525_v51 = vpack.c.bf16 %v480_v3, %v480_v3  ;;  %v4895_v3 = vld [vmem:[#allocation6 + $0x5f4] ss:$28 sps:$4 sm:$0xff]  }
 0x14f   :  { %3520 = vmatpush1.bf16.msra.mxu1 %v4761_v5  ;;  %3438 = vmatpush1.bf16.msra.mxu0 %v4758_v12  ;;  %v4829_v5 = vld [vmem:[#allocation6 + $0x38c] ss:$28 sps:$4 sm:$0xff]   ;;  %v4826_v12 = vld [vmem:[#allocation6 + $0xa84] ss:$28 sps:$4 sm:$0xff]  }
 0x150   :  { %3521 = vmatprep.subr.bf16.mxu1 %v4769_v13  ;;  %3439 = vmatprep.subr.bf16.mxu0 %v4766_v14  ;;  %v483_v13 = vmax.f32 %v472_v1, 0.0  ;;  %v4827_v14 = vld [vmem:[#allocation6 + $0x388] ss:$28 sps:$4 sm:$0xff]   ;;  %v4884_v1 = vld [vmem:[#allocation6 + $0xcb0] ss:$28 sps:$4 sm:$0xff]  }
 0x153   :  { %3522 = vmatpush1.bf16.msra.mxu1 %v4767_v15  ;;  %3440 = vmatpush1.bf16.msra.mxu0 %v4764_v16  ;;  %v4824_v15 = vld [vmem:[#allocation6 + $0xa80] ss:$28 sps:$4 sm:$0xff]  }
 0x154   :  { %3523 = vmatprep.subr.bf16.mxu1 %v4775_v17  ;;  %3441 = vmatprep.subr.bf16.mxu0 %v4772_v18  ;;  %v4832_v16 = vld [vmem:[#allocation6 + $0xabc] ss:$28 sps:$4 sm:$0xff]   ;;  %v5528_v17 = vpack.c.bf16 %v483_v13, %v483_v13  ;;  %v4898_v13 = vld [vmem:[#allocation6 + $0xd24] ss:$28 sps:$4 sm:$0xff]  }
 0x155   :  { %v4833_v18 = vld [vmem:[#allocation6 + $0x3c0] ss:$28 sps:$4 sm:$0xff]  }
 0x157   :  { %3524 = vmatpush1.bf16.msra.mxu1 %v4773_v19  ;;  %3442 = vmatpush1.bf16.msra.mxu0 %v4770_v20  ;;  %v4830_v19 = vld [vmem:[#allocation6 + $0xab8] ss:$28 sps:$4 sm:$0xff]  }
 0x158   :  { %3525 = vmatprep.subr.bf16.mxu1 %v4781_v21  ;;  %3443 = vmatprep.subr.bf16.mxu0 %v4778_v22  ;;  %v4841_v20 = vld [vmem:[#allocation6 + $0x3fc] ss:$28 sps:$4 sm:$0xff]   ;;  %v4838_v21 = vld [vmem:[#allocation6 + $0xaf4] ss:$28 sps:$4 sm:$0xff]  }
 0x159   :  { %v4839_v22 = vld [vmem:[#allocation6 + $0x3f8] ss:$28 sps:$4 sm:$0xff]  }
 0x15b   :  { %3526 = vmatpush1.bf16.msra.mxu1 %v4779_v23  ;;  %3444 = vmatpush1.bf16.msra.mxu0 %v4776_v24  ;;  %v4836_v23 = vld [vmem:[#allocation6 + $0xaf0] ss:$28 sps:$4 sm:$0xff]  }
 0x15c   :  { %3527 = vmatprep.subr.bf16.mxu1 %v4787_v25  ;;  %3445 = vmatprep.subr.bf16.mxu0 %v4784_v26  ;;  %v4847_v24 = vld [vmem:[#allocation6 + $0x434] ss:$28 sps:$4 sm:$0xff]   ;;  %v4844_v25 = vld [vmem:[#allocation6 + $0xb2c] ss:$28 sps:$4 sm:$0xff]  }
 0x15d   :  { %v4845_v26 = vld [vmem:[#allocation6 + $0x430] ss:$28 sps:$4 sm:$0xff]  }
 0x15f   :  { %3528 = vmatpush1.bf16.msra.mxu1 %v4785_v27  ;;  %3446 = vmatpush1.bf16.msra.mxu0 %v4782_v28  ;;  %v4842_v27 = vld [vmem:[#allocation6 + $0xb28] ss:$28 sps:$4 sm:$0xff]  }
 0x160   :  { %3529 = vmatprep.subr.bf16.mxu1 %v4793_v29  ;;  %3447 = vmatprep.subr.bf16.mxu0 %v4790_v30  ;;  %v4853_v28 = vld [vmem:[#allocation6 + $0x46c] ss:$28 sps:$4 sm:$0xff]   ;;  %v4850_v29 = vld [vmem:[#allocation6 + $0xb64] ss:$28 sps:$4 sm:$0xff]  }
 0x161   :  { %v4851_v30 = vld [vmem:[#allocation6 + $0x468] ss:$28 sps:$4 sm:$0xff]  }
 0x163   :  { %3530 = vmatpush1.bf16.msra.mxu1 %v4791_v31  ;;  %3448 = vmatpush1.bf16.msra.mxu0 %v4788_v32  ;;  %v4848_v31 = vld [vmem:[#allocation6 + $0xb60] ss:$28 sps:$4 sm:$0xff]  }
 0x164   :  { %3531 = vmatprep.subr.bf16.mxu1 %v4799_v33  ;;  %3449 = vmatprep.subr.bf16.mxu0 %v4796_v36  ;;  %v4859_v32 = vld [vmem:[#allocation6 + $0x4a4] ss:$28 sps:$4 sm:$0xff]   ;;  %v4856_v33 = vld [vmem:[#allocation6 + $0xb9c] ss:$28 sps:$4 sm:$0xff]  }
 0x165   :  { %v4857_v36 = vld [vmem:[#allocation6 + $0x4a0] ss:$28 sps:$4 sm:$0xff]  }
 0x167   :  { %3532 = vmatpush1.bf16.msra.mxu1 %v4797_v39  ;;  %3450 = vmatpush1.bf16.msra.mxu0 %v4794_v40  ;;  %v4854_v39 = vld [vmem:[#allocation6 + $0xb98] ss:$28 sps:$4 sm:$0xff]  }
 0x168   :  { %3533 = vmatprep.subr.bf16.mxu1 %v4805_v41  ;;  %3451 = vmatprep.subr.bf16.mxu0 %v4802_v42  ;;  %v4865_v40 = vld [vmem:[#allocation6 + $0x4dc] ss:$28 sps:$4 sm:$0xff]   ;;  %v4862_v41 = vld [vmem:[#allocation6 + $0xbd4] ss:$28 sps:$4 sm:$0xff]  }
 0x169   :  { %v4863_v42 = vld [vmem:[#allocation6 + $0x4d8] ss:$28 sps:$4 sm:$0xff]  }
 0x16b   :  { %3534 = vmatpush1.bf16.msra.mxu1 %v4803_v44  ;;  %3452 = vmatpush1.bf16.msra.mxu0 %v4800_v46  ;;  %v4860_v44 = vld [vmem:[#allocation6 + $0xbd0] ss:$28 sps:$4 sm:$0xff]  }
 0x16c   :  { %3535 = vmatprep.subr.bf16.mxu1 %v4811_v47  ;;  %3453 = vmatprep.subr.bf16.mxu0 %v4808_v48  ;;  %v4871_v46 = vld [vmem:[#allocation6 + $0x514] ss:$28 sps:$4 sm:$0xff]   ;;  %v4868_v47 = vld [vmem:[#allocation6 + $0xc0c] ss:$28 sps:$4 sm:$0xff]  }
 0x16d   :  { %v4869_v48 = vld [vmem:[#allocation6 + $0x510] ss:$28 sps:$4 sm:$0xff]  }
 0x16f   :  { %3536 = vmatpush1.bf16.msra.mxu1 %v4809_v50  ;;  %3454 = vmatpush1.bf16.msra.mxu0 %v4806_v53  ;;  %v4877_v50 = vld [vmem:[#allocation6 + $0x54c] ss:$28 sps:$4 sm:$0xff]  }
 0x170   :  { %3537 = vmatprep.subr.bf16.mxu1 %v4817_v54  ;;  %3455 = vmatprep.subr.bf16.mxu0 %v4814_v55  ;;  %v4875_v53 = vld [vmem:[#allocation6 + $0x548] ss:$28 sps:$4 sm:$0xff]   ;;  %v4872_v54 = vld [vmem:[#allocation6 + $0xc40] ss:$28 sps:$4 sm:$0xff]  }
 0x171   :  { %v4883_v55 = vld [vmem:[#allocation6 + $0x584] ss:$28 sps:$4 sm:$0xff]  }
 0x173   :  { %3538 = vmatpush1.bf16.msra.mxu1 %v4815_v60  ;;  %3456 = vmatpush1.bf16.msra.mxu0 %v4812_v61  ;;  %v4878_v60 = vld [vmem:[#allocation6 + $0xc78] ss:$28 sps:$4 sm:$0xff]  }
 0x174   :  { %3539 = vmatprep.subr.bf16.mxu1 %v4823_v62  ;;  %3457 = vmatprep.subr.bf16.mxu0 %v4820_v63  ;;  %v4889_v61 = vld [vmem:[#allocation6 + $0x5bc] ss:$28 sps:$4 sm:$0xff]   ;;  %v4886_v62 = vld [vmem:[#allocation6 + $0xcb4] ss:$28 sps:$4 sm:$0xff]  }
 0x175   :  { %v4887_v63 = vld [vmem:[#allocation6 + $0x5b8] ss:$28 sps:$4 sm:$0xff]  }
 0x177   :  { %3540 = vmatpush1.bf16.msra.mxu1 %v4821_v4  ;;  %3458 = vmatpush1.bf16.msra.mxu0 %v4818_v0  ;;  %v4892_v4 = vld [vmem:[#allocation6 + $0xcec] ss:$28 sps:$4 sm:$0xff]  }
 0x178   :  { %3550 = vmatprep.subr.bf16.mxu1 %v4829_v5  ;;  %3468 = vmatprep.subr.bf16.mxu0 %v4826_v12  ;;  %v4893_v0 = vld [vmem:[#allocation6 + $0x5f0] ss:$28 sps:$4 sm:$0xff]   ;;  %v4890_v5 = vld [vmem:[#allocation6 + $0xce8] ss:$28 sps:$4 sm:$0xff]  }
 0x179   :  { %v4901_v12 = vld [vmem:[#allocation6 + $0x62c] ss:$28 sps:$4 sm:$0xff]  }
 0x17a   :  { %3542 = vmatmul.mubr.bf16.vlgmr.msra.gmra.mrb[12].mxu1 %v5495_v37  ;;  %3460 = vmatmul.mubr.bf16.vlgmr.msra.gmra.mrb[8].mxu0 %v5525_v51 }
 0x17b   :  { %3551 = vmatpush1.bf16.msra.mxu1 %v4827_v14  ;;  %3469 = vmatpush1.bf16.msra.mxu0 %v4824_v15  ;;  %v4899_v14 = vld [vmem:[#allocation6 + $0x628] ss:$28 sps:$4 sm:$0xff]   ;;  %v134_v15 = vsub.s32 6, %v5471_v6 }
 0x17c   :  { %3582 = vmatprep.mubr.bf16.mxu1 %v5497_v38  ;;  %3470 = vmatprep.subr.bf16.mxu0 %v4832_v16  ;;  %v4896_v16 = vld [vmem:[#allocation6 + $0xd20] ss:$28 sps:$4 sm:$0xff]  }
 0x17d   :  { %3552 = vmatprep.subr.bf16.mxu1 %v4835_v59  ;;  %3500 = vmatprep.mubr.bf16.mxu0 %v5528_v17  ;;  %v4907_v59 = vld [vmem:[#allocation6 + $0x664] ss:$28 sps:$4 sm:$0xff]  }
 0x17f   :  { %3553 = vmatpush1.bf16.msra.mxu1 %v4833_v18  ;;  %3471 = vmatpush1.bf16.msra.mxu0 %v4830_v19  ;;  %v4904_v18 = vld [vmem:[#allocation6 + $0xd5c] ss:$28 sps:$4 sm:$0xff]  }
 0x180   :  { %3554 = vmatprep.subr.bf16.mxu1 %v4841_v20  ;;  %3472 = vmatprep.subr.bf16.mxu0 %v4838_v21  ;;  %v4905_v19 = vld [vmem:[#allocation6 + $0x660] ss:$28 sps:$4 sm:$0xff]   ;;  %v135_v20 = vrot.slane %v5473_v7, %v134_v15  ;;  %v4902_v21 = vld [vmem:[#allocation6 + $0xd58] ss:$28 sps:$4 sm:$0xff]   ;;  %v4914_v7 = vld [vmem:[#allocation6 + $0xdc8] ss:$28 sps:$4 sm:$0xff]  }
 0x183   :  { %3555 = vmatpush1.bf16.msra.mxu1 %v4839_v22  ;;  %3473 = vmatpush1.bf16.msra.mxu0 %v4836_v23  ;;  %v4913_v22 = vld [vmem:[#allocation6 + $0x69c] ss:$28 sps:$4 sm:$0xff]   ;;  %v4910_v23 = vld [vmem:[#allocation6 + $0xd94] ss:$28 sps:$4 sm:$0xff]  }
 0x184   :  { %3556 = vmatprep.subr.bf16.mxu1 %v4847_v24  ;;  %3474 = vmatprep.subr.bf16.mxu0 %v4844_v25  ;;  %v470_v24 = vadd.f32 %v5510_v56, %v135_v20  ;;  %v4911_v25 = vld [vmem:[#allocation6 + $0x698] ss:$28 sps:$4 sm:$0xff]   ;;  %v4920_v56 = vld [vmem:[#allocation6 + $0x708] ss:$28 sps:$4 sm:$0xff]  }
 0x185   :  { %v4976_v20 = vld [vmem:[#allocation6 + $0x904] ss:$28 sps:$4 sm:$0xff]  }
 0x187   :  { %3557 = vmatpush1.bf16.msra.mxu1 %v4845_v26  ;;  %3475 = vmatpush1.bf16.msra.mxu0 %v4842_v27  ;;  %v4908_v26 = vld [vmem:[#allocation6 + $0xd90] ss:$28 sps:$4 sm:$0xff]  }
 0x188   :  { %3558 = vmatprep.subr.bf16.mxu1 %v4853_v28  ;;  %3476 = vmatprep.subr.bf16.mxu0 %v4850_v29  ;;  %v4919_v27 = vld [vmem:[#allocation6 + $0x6d4] ss:$28 sps:$4 sm:$0xff]   ;;  %v4916_v28 = vld [vmem:[#allocation6 + $0xdcc] ss:$28 sps:$4 sm:$0xff]   ;;  %v482_v29 = vmax.f32 %v470_v24, 0.0 }
 0x189   :  { %v4982_v24 = vld [vmem:[#allocation6 + $0x93c] ss:$28 sps:$4 sm:$0xff]  }
 0x18b   :  { %3559 = vmatpush1.bf16.msra.mxu1 %v4851_v30  ;;  %3477 = vmatpush1.bf16.msra.mxu0 %v4848_v31  ;;  %v4917_v30 = vld [vmem:[#allocation6 + $0x6d0] ss:$28 sps:$4 sm:$0xff]  }
 0x18c   :  { %3560 = vmatprep.subr.bf16.mxu1 %v4859_v32  ;;  %3478 = vmatprep.subr.bf16.mxu0 %v4856_v33  ;;  %v4922_v31 = vld [vmem:[#allocation6 + $0x70c] ss:$28 sps:$4 sm:$0xff]   ;;  %v4925_v32 = vld [vmem:[#allocation6 + $0x14] ss:$28 sps:$4 sm:$0xff]   ;;  %v5538_v33 = vpack.c.bf16 %v482_v29, %v482_v29  ;;  %v4991_v29 = vld [vmem:[#allocation6 + $0x27c] ss:$28 sps:$4 sm:$0xff]  }
 0x18f   :  { %3561 = vmatpush1.bf16.msra.mxu1 %v4857_v36  ;;  %3479 = vmatpush1.bf16.msra.mxu0 %v4854_v39  ;;  %v4923_v36 = vld [vmem:[#allocation6 + $0x10] ss:$28 sps:$4 sm:$0xff]   ;;  %v4928_v39 = vld [vmem:[#allocation6 + $0x744] ss:$28 sps:$4 sm:$0xff]  }
 0x190   :  { %3562 = vmatprep.subr.bf16.mxu1 %v4865_v40  ;;  %3480 = vmatprep.subr.bf16.mxu0 %v4862_v41  ;;  %v4931_v40 = vld [vmem:[#allocation6 + $0x4c] ss:$28 sps:$4 sm:$0xff]   ;;  %v4926_v41 = vld [vmem:[#allocation6 + $0x740] ss:$28 sps:$4 sm:$0xff]  }
 0x193   :  { %3563 = vmatpush1.bf16.msra.mxu1 %v4863_v42  ;;  %3481 = vmatpush1.bf16.msra.mxu0 %v4860_v44  ;;  %v4929_v42 = vld [vmem:[#allocation6 + $0x48] ss:$28 sps:$4 sm:$0xff]   ;;  %v4934_v44 = vld [vmem:[#allocation6 + $0x77c] ss:$28 sps:$4 sm:$0xff]  }
 0x194   :  { %3564 = vmatprep.subr.bf16.mxu1 %v4871_v46  ;;  %3482 = vmatprep.subr.bf16.mxu0 %v4868_v47  ;;  %v4937_v46 = vld [vmem:[#allocation6 + $0x84] ss:$28 sps:$4 sm:$0xff]   ;;  %v4932_v47 = vld [vmem:[#allocation6 + $0x778] ss:$28 sps:$4 sm:$0xff]  }
 0x197   :  { %3565 = vmatpush1.bf16.msra.mxu1 %v4869_v48  ;;  %3483 = vmatpush1.bf16.msra.mxu0 %v4866_v49  ;;  %v4935_v48 = vld [vmem:[#allocation6 + $0x80] ss:$28 sps:$4 sm:$0xff]   ;;  %v4940_v49 = vld [vmem:[#allocation6 + $0x7b4] ss:$28 sps:$4 sm:$0xff]  }
 0x198   :  { %3566 = vmatprep.subr.bf16.mxu1 %v4877_v50  ;;  %3484 = vmatprep.subr.bf16.mxu0 %v4874_v52  ;;  %v4943_v50 = vld [vmem:[#allocation6 + $0xbc] ss:$28 sps:$4 sm:$0xff]   ;;  %v4938_v52 = vld [vmem:[#allocation6 + $0x7b0] ss:$28 sps:$4 sm:$0xff]  }
 0x19b   :  { %3567 = vmatpush1.bf16.msra.mxu1 %v4875_v53  ;;  %3485 = vmatpush1.bf16.msra.mxu0 %v4872_v54  ;;  %v4941_v53 = vld [vmem:[#allocation6 + $0xb8] ss:$28 sps:$4 sm:$0xff]   ;;  %v4946_v54 = vld [vmem:[#allocation6 + $0x7ec] ss:$28 sps:$4 sm:$0xff]  }
 0x19c   :  { %3568 = vmatprep.subr.bf16.mxu1 %v4883_v55  ;;  %3486 = vmatprep.subr.bf16.mxu0 %v4880_v57  ;;  %v4949_v55 = vld [vmem:[#allocation6 + $0xf4] ss:$28 sps:$4 sm:$0xff]   ;;  %v4944_v57 = vld [vmem:[#allocation6 + $0x7e8] ss:$28 sps:$4 sm:$0xff]  }
 0x19f   :  { %3569 = vmatpush1.bf16.msra.mxu1 %v4881_v58  ;;  %3487 = vmatpush1.bf16.msra.mxu0 %v4878_v60  ;;  %v4947_v58 = vld [vmem:[#allocation6 + $0xf0] ss:$28 sps:$4 sm:$0xff]   ;;  %v4952_v60 = vld [vmem:[#allocation6 + $0x824] ss:$28 sps:$4 sm:$0xff]  }
 0x1a0   :  { %3570 = vmatprep.subr.bf16.mxu1 %v4889_v61  ;;  %3488 = vmatprep.subr.bf16.mxu0 %v4886_v62  ;;  %v4955_v61 = vld [vmem:[#allocation6 + $0x12c] ss:$28 sps:$4 sm:$0xff]   ;;  %v4950_v62 = vld [vmem:[#allocation6 + $0x820] ss:$28 sps:$4 sm:$0xff]  }
 0x1a3   :  { %3571 = vmatpush1.bf16.msra.mxu1 %v4887_v63  ;;  %3489 = vmatpush1.bf16.msra.mxu0 %v4884_v1  ;;  %v4953_v63 = vld [vmem:[#allocation6 + $0x128] ss:$28 sps:$4 sm:$0xff]   ;;  %v4958_v1 = vld [vmem:[#allocation6 + $0x85c] ss:$28 sps:$4 sm:$0xff]  }
 0x1a4   :  { %3572 = vmatprep.subr.bf16.mxu1 %v4895_v3  ;;  %3490 = vmatprep.subr.bf16.mxu0 %v4892_v4  ;;  %v4961_v3 = vld [vmem:[#allocation6 + $0x164] ss:$28 sps:$4 sm:$0xff]   ;;  %v4956_v4 = vld [vmem:[#allocation6 + $0x858] ss:$28 sps:$4 sm:$0xff]  }
 0x1a7   :  { %3573 = vmatpush1.bf16.msra.mxu1 %v4893_v0  ;;  %3491 = vmatpush1.bf16.msra.mxu0 %v4890_v5  ;;  %v4959_v0 = vld [vmem:[#allocation6 + $0x160] ss:$28 sps:$4 sm:$0xff]   ;;  %v4964_v5 = vld [vmem:[#allocation6 + $0x894] ss:$28 sps:$4 sm:$0xff]  }
 0x1a8   :  { %3574 = vmatprep.subr.bf16.mxu1 %v4901_v12  ;;  %3492 = vmatprep.subr.bf16.mxu0 %v4898_v13  ;;  %v4967_v12 = vld [vmem:[#allocation6 + $0x19c] ss:$28 sps:$4 sm:$0xff]   ;;  %v4962_v13 = vld [vmem:[#allocation6 + $0x890] ss:$28 sps:$4 sm:$0xff]  }
 0x1ab   :  { %3575 = vmatpush1.bf16.msra.mxu1 %v4899_v14  ;;  %3493 = vmatpush1.bf16.msra.mxu0 %v4896_v16  ;;  %v4965_v14 = vld [vmem:[#allocation6 + $0x198] ss:$28 sps:$4 sm:$0xff]   ;;  %v4970_v16 = vld [vmem:[#allocation6 + $0x8cc] ss:$28 sps:$4 sm:$0xff]  }
 0x1ac   :  { %3576 = vmatprep.subr.bf16.mxu1 %v4907_v59  ;;  %3494 = vmatprep.subr.bf16.mxu0 %v4904_v18  ;;  %v4973_v59 = vld [vmem:[#allocation6 + $0x1d4] ss:$28 sps:$4 sm:$0xff]   ;;  %v4968_v18 = vld [vmem:[#allocation6 + $0x8c8] ss:$28 sps:$4 sm:$0xff]  }
 0x1af   :  { %3577 = vmatpush1.bf16.msra.mxu1 %v4905_v19  ;;  %3495 = vmatpush1.bf16.msra.mxu0 %v4902_v21  ;;  %v4971_v19 = vld [vmem:[#allocation6 + $0x1d0] ss:$28 sps:$4 sm:$0xff]  }
 0x1b0   :  { %3578 = vmatprep.subr.bf16.mxu1 %v4913_v22  ;;  %3496 = vmatprep.subr.bf16.mxu0 %v4910_v23  ;;  %v4979_v21 = vld [vmem:[#allocation6 + $0x20c] ss:$28 sps:$4 sm:$0xff]   ;;  %v4974_v22 = vld [vmem:[#allocation6 + $0x900] ss:$28 sps:$4 sm:$0xff]  }
 0x1b1   :  { %v4977_v23 = vld [vmem:[#allocation6 + $0x208] ss:$28 sps:$4 sm:$0xff]  }
 0x1b3   :  { %3579 = vmatpush1.bf16.msra.mxu1 %v4911_v25  ;;  %3497 = vmatpush1.bf16.msra.mxu0 %v4908_v26  ;;  %v4985_v25 = vld [vmem:[#allocation6 + $0x244] ss:$28 sps:$4 sm:$0xff]   ;;  %v4980_v26 = vld [vmem:[#allocation6 + $0x938] ss:$28 sps:$4 sm:$0xff]  }
 0x1b4   :  { %3580 = vmatprep.subr.bf16.mxu1 %v4919_v27  ;;  %3498 = vmatprep.subr.bf16.mxu0 %v4916_v28  ;;  %v4983_v27 = vld [vmem:[#allocation6 + $0x240] ss:$28 sps:$4 sm:$0xff]   ;;  %v4988_v28 = vld [vmem:[#allocation6 + $0x974] ss:$28 sps:$4 sm:$0xff]  }
 0x1b7   :  { %3581 = vmatpush1.bf16.msra.mxu1 %v4917_v30  ;;  %3499 = vmatpush1.bf16.msra.mxu0 %v4914_v7  ;;  %v4986_v30 = vld [vmem:[#allocation6 + $0x970] ss:$28 sps:$4 sm:$0xff]   ;;  %v4989_v7 = vld [vmem:[#allocation6 + $0x278] ss:$28 sps:$4 sm:$0xff]  }
 0x1b8   :  { %3591 = vmatprep.subr.bf16.mxu1 %v4922_v31  ;;  %3673 = vmatprep.subr.bf16.mxu0 %v4925_v32  ;;  %v4994_v31 = vld [vmem:[#allocation6 + $0x9ac] ss:$28 sps:$4 sm:$0xff]   ;;  %v4997_v32 = vld [vmem:[#allocation6 + $0x2b4] ss:$28 sps:$4 sm:$0xff]  }
 0x1ba   :  { %3583 = vmatmul.mubr.bf16.vlgmr.msra.gmra.mrb[12].mxu1 %v5491_v34  ;;  %3501 = vmatmul.mubr.bf16.vlgmr.msra.gmra.mrb[8].mxu0 %v5538_v33 }
 0x1bb   :  { %3592 = vmatpush1.bf16.msra.mxu1 %v4920_v56  ;;  %3623 = vmatprep.mubr.bf16.mxu1 %v5514_v2  ;;  %v4992_v56 = vld [vmem:[#allocation6 + $0x9a8] ss:$28 sps:$4 sm:$0xff]  }
 0x1bc   :  { %3674 = vmatpush1.bf16.msra.mxu0 %v4923_v36  ;;  %3705 = vmatprep.mubr.bf16.mxu0 %v5493_v35  ;;  %v4995_v36 = vld [vmem:[#allocation6 + $0x2b0] ss:$28 sps:$4 sm:$0xff]  }
 0x1bd   :  { %3593 = vmatprep.subr.bf16.mxu1 %v4928_v39  ;;  %3675 = vmatprep.subr.bf16.mxu0 %v4931_v40  ;;  %v5000_v39 = vld [vmem:[#allocation6 + $0x9e4] ss:$28 sps:$4 sm:$0xff]   ;;  %v5003_v40 = vld [vmem:[#allocation6 + $0x2ec] ss:$28 sps:$4 sm:$0xff]  }
 0x1bf   :  { %3594 = vmatpush1.bf16.msra.mxu1 %v4926_v41  ;;  %v4998_v41 = vld [vmem:[#allocation6 + $0x9e0] ss:$28 sps:$4 sm:$0xff]  }
 0x1c0   :  { %3676 = vmatpush1.bf16.msra.mxu0 %v4929_v42  ;;  %3595 = vmatprep.subr.bf16.mxu1 %v4934_v44  ;;  %v5001_v42 = vld [vmem:[#allocation6 + $0x2e8] ss:$28 sps:$4 sm:$0xff]   ;;  %v5006_v44 = vld [vmem:[#allocation6 + $0xa1c] ss:$28 sps:$4 sm:$0xff]  }
 0x1c1   :  { %3677 = vmatprep.subr.bf16.mxu0 %v4937_v46  ;;  %v5009_v46 = vld [vmem:[#allocation6 + $0x324] ss:$28 sps:$4 sm:$0xff]  }
 0x1c3   :  { %3596 = vmatpush1.bf16.msra.mxu1 %v4932_v47  ;;  %v5004_v47 = vld [vmem:[#allocation6 + $0xa18] ss:$28 sps:$4 sm:$0xff]  }
 0x1c4   :  { %3678 = vmatpush1.bf16.msra.mxu0 %v4935_v48  ;;  %3597 = vmatprep.subr.bf16.mxu1 %v4940_v49  ;;  %v5007_v48 = vld [vmem:[#allocation6 + $0x320] ss:$28 sps:$4 sm:$0xff]   ;;  %v5012_v49 = vld [vmem:[#allocation6 + $0xa54] ss:$28 sps:$4 sm:$0xff]  }
 0x1c5   :  { %3679 = vmatprep.subr.bf16.mxu0 %v4943_v50  ;;  %v5015_v50 = vld [vmem:[#allocation6 + $0x35c] ss:$28 sps:$4 sm:$0xff]  }
 0x1c7   :  { %3598 = vmatpush1.bf16.msra.mxu1 %v4938_v52  ;;  %v5010_v52 = vld [vmem:[#allocation6 + $0xa50] ss:$28 sps:$4 sm:$0xff]  }
 0x1c8   :  { %3680 = vmatpush1.bf16.msra.mxu0 %v4941_v53  ;;  %3599 = vmatprep.subr.bf16.mxu1 %v4946_v54  ;;  %v5013_v53 = vld [vmem:[#allocation6 + $0x358] ss:$28 sps:$4 sm:$0xff]   ;;  %v5018_v54 = vld [vmem:[#allocation6 + $0xa8c] ss:$28 sps:$4 sm:$0xff]  }
 0x1c9   :  { %3681 = vmatprep.subr.bf16.mxu0 %v4949_v55  ;;  %v5021_v55 = vld [vmem:[#allocation6 + $0x394] ss:$28 sps:$4 sm:$0xff]  }
 0x1cb   :  { %3600 = vmatpush1.bf16.msra.mxu1 %v4944_v57  ;;  %v5016_v57 = vld [vmem:[#allocation6 + $0xa88] ss:$28 sps:$4 sm:$0xff]  }
 0x1cc   :  { %3682 = vmatpush1.bf16.msra.mxu0 %v4947_v58  ;;  %3601 = vmatprep.subr.bf16.mxu1 %v4952_v60  ;;  %v5019_v58 = vld [vmem:[#allocation6 + $0x390] ss:$28 sps:$4 sm:$0xff]   ;;  %v5024_v60 = vld [vmem:[#allocation6 + $0xac4] ss:$28 sps:$4 sm:$0xff]  }
 0x1cd   :  { %3683 = vmatprep.subr.bf16.mxu0 %v4955_v61  ;;  %v5027_v61 = vld [vmem:[#allocation6 + $0x3cc] ss:$28 sps:$4 sm:$0xff]  }
 0x1cf   :  { %3602 = vmatpush1.bf16.msra.mxu1 %v4950_v62  ;;  %v5022_v62 = vld [vmem:[#allocation6 + $0xac0] ss:$28 sps:$4 sm:$0xff]  }
 0x1d0   :  { %3684 = vmatpush1.bf16.msra.mxu0 %v4953_v63  ;;  %3603 = vmatprep.subr.bf16.mxu1 %v4958_v1  ;;  %v5025_v63 = vld [vmem:[#allocation6 + $0x3c8] ss:$28 sps:$4 sm:$0xff]   ;;  %v5030_v1 = vld [vmem:[#allocation6 + $0xafc] ss:$28 sps:$4 sm:$0xff]  }
 0x1d1   :  { %3685 = vmatprep.subr.bf16.mxu0 %v4961_v3  ;;  %v5033_v3 = vld [vmem:[#allocation6 + $0x404] ss:$28 sps:$4 sm:$0xff]  }
 0x1d3   :  { %3604 = vmatpush1.bf16.msra.mxu1 %v4956_v4  ;;  %v5028_v4 = vld [vmem:[#allocation6 + $0xaf8] ss:$28 sps:$4 sm:$0xff]  }
 0x1d4   :  { %3686 = vmatpush1.bf16.msra.mxu0 %v4959_v0  ;;  %3605 = vmatprep.subr.bf16.mxu1 %v4964_v5  ;;  %v5031_v0 = vld [vmem:[#allocation6 + $0x400] ss:$28 sps:$4 sm:$0xff]   ;;  %v5036_v5 = vld [vmem:[#allocation6 + $0xb34] ss:$28 sps:$4 sm:$0xff]  }
 0x1d5   :  { %3687 = vmatprep.subr.bf16.mxu0 %v4967_v12  ;;  %v5039_v12 = vld [vmem:[#allocation6 + $0x43c] ss:$28 sps:$4 sm:$0xff]  }
 0x1d7   :  { %3606 = vmatpush1.bf16.msra.mxu1 %v4962_v13  ;;  %v5034_v13 = vld [vmem:[#allocation6 + $0xb30] ss:$28 sps:$4 sm:$0xff]  }
 0x1d8   :  { %3688 = vmatpush1.bf16.msra.mxu0 %v4965_v14  ;;  %3607 = vmatprep.subr.bf16.mxu1 %v4970_v16  ;;  %v5037_v14 = vld [vmem:[#allocation6 + $0x438] ss:$28 sps:$4 sm:$0xff]   ;;  %v5042_v16 = vld [vmem:[#allocation6 + $0xb6c] ss:$28 sps:$4 sm:$0xff]  }
 0x1d9   :  { %3689 = vmatprep.subr.bf16.mxu0 %v4973_v59  ;;  %v5045_v59 = vld [vmem:[#allocation6 + $0x474] ss:$28 sps:$4 sm:$0xff]  }
 0x1db   :  { %3608 = vmatpush1.bf16.msra.mxu1 %v4968_v18  ;;  %v5040_v18 = vld [vmem:[#allocation6 + $0xb68] ss:$28 sps:$4 sm:$0xff]  }
 0x1dc   :  { %3690 = vmatpush1.bf16.msra.mxu0 %v4971_v19  ;;  %3609 = vmatprep.subr.bf16.mxu1 %v4976_v20  ;;  %v5043_v19 = vld [vmem:[#allocation6 + $0x470] ss:$28 sps:$4 sm:$0xff]   ;;  %v5048_v20 = vld [vmem:[#allocation6 + $0xba4] ss:$28 sps:$4 sm:$0xff]  }
 0x1dd   :  { %3691 = vmatprep.subr.bf16.mxu0 %v4979_v21  ;;  %v5051_v21 = vld [vmem:[#allocation6 + $0x4ac] ss:$28 sps:$4 sm:$0xff]  }
 0x1df   :  { %3610 = vmatpush1.bf16.msra.mxu1 %v4974_v22  ;;  %v5046_v22 = vld [vmem:[#allocation6 + $0xba0] ss:$28 sps:$4 sm:$0xff]  }
 0x1e0   :  { %3692 = vmatpush1.bf16.msra.mxu0 %v4977_v23  ;;  %3611 = vmatprep.subr.bf16.mxu1 %v4982_v24  ;;  %v5049_v23 = vld [vmem:[#allocation6 + $0x4a8] ss:$28 sps:$4 sm:$0xff]   ;;  %v5054_v24 = vld [vmem:[#allocation6 + $0xbdc] ss:$28 sps:$4 sm:$0xff]  }
 0x1e1   :  { %3693 = vmatprep.subr.bf16.mxu0 %v4985_v25 }
 0x1e3   :  { %3612 = vmatpush1.bf16.msra.mxu1 %v4980_v26  ;;  %v5057_v26 = vld [vmem:[#allocation6 + $0x4e4] ss:$28 sps:$4 sm:$0xff]  }
 0x1e4   :  { %3694 = vmatpush1.bf16.msra.mxu0 %v4983_v27  ;;  %3613 = vmatprep.subr.bf16.mxu1 %v4988_v28 }
 0x1e5   :  { %3695 = vmatprep.subr.bf16.mxu0 %v4991_v29  ;;  %v5052_v29 = vld [vmem:[#allocation6 + $0xbd8] ss:$28 sps:$4 sm:$0xff]  }
 0x1e7   :  { %3614 = vmatpush1.bf16.msra.mxu1 %v4986_v30 }
 0x1e8   :  { %3696 = vmatpush1.bf16.msra.mxu0 %v4989_v7  ;;  %3615 = vmatprep.subr.bf16.mxu1 %v4994_v31  ;;  %v5055_v7 = vld [vmem:[#allocation6 + $0x4e0] ss:$28 sps:$4 sm:$0xff]   ;;  %v5060_v31 = vld [vmem:[#allocation6 + $0xc14] ss:$28 sps:$4 sm:$0xff]  }
 0x1e9   :  { %3697 = vmatprep.subr.bf16.mxu0 %v4997_v32  ;;  %v5063_v32 = vld [vmem:[#allocation6 + $0x51c] ss:$28 sps:$4 sm:$0xff]  }
 0x1eb   :  { %3616 = vmatpush1.bf16.msra.mxu1 %v4992_v56  ;;  %v5058_v56 = vld [vmem:[#allocation6 + $0xc10] ss:$28 sps:$4 sm:$0xff]  }
 0x1ec   :  { %3698 = vmatpush1.bf16.msra.mxu0 %v4995_v36  ;;  %3617 = vmatprep.subr.bf16.mxu1 %v5000_v39  ;;  %v5061_v36 = vld [vmem:[#allocation6 + $0x518] ss:$28 sps:$4 sm:$0xff]   ;;  %v5066_v39 = vld [vmem:[#allocation6 + $0xc4c] ss:$28 sps:$4 sm:$0xff]  }
 0x1ed   :  { %3699 = vmatprep.subr.bf16.mxu0 %v5003_v40  ;;  %v5069_v40 = vld [vmem:[#allocation6 + $0x554] ss:$28 sps:$4 sm:$0xff]  }
 0x1ef   :  { %3618 = vmatpush1.bf16.msra.mxu1 %v4998_v41  ;;  %v5064_v41 = vld [vmem:[#allocation6 + $0xc48] ss:$28 sps:$4 sm:$0xff]  }
 0x1f0   :  { %3700 = vmatpush1.bf16.msra.mxu0 %v5001_v42  ;;  %3619 = vmatprep.subr.bf16.mxu1 %v5006_v44  ;;  %v5067_v42 = vld [vmem:[#allocation6 + $0x550] ss:$28 sps:$4 sm:$0xff]   ;;  %v5072_v44 = vld [vmem:[#allocation6 + $0xc84] ss:$28 sps:$4 sm:$0xff]  }
 0x1f1   :  { %3701 = vmatprep.subr.bf16.mxu0 %v5009_v46  ;;  %v5075_v46 = vld [vmem:[#allocation6 + $0x58c] ss:$28 sps:$4 sm:$0xff]  }
 0x1f3   :  { %3620 = vmatpush1.bf16.msra.mxu1 %v5004_v47  ;;  %v5070_v47 = vld [vmem:[#allocation6 + $0xc80] ss:$28 sps:$4 sm:$0xff]  }
 0x1f4   :  { %3702 = vmatpush1.bf16.msra.mxu0 %v5007_v48  ;;  %3621 = vmatprep.subr.bf16.mxu1 %v5012_v49  ;;  %v5073_v48 = vld [vmem:[#allocation6 + $0x588] ss:$28 sps:$4 sm:$0xff]   ;;  %v5078_v49 = vld [vmem:[#allocation6 + $0xcbc] ss:$28 sps:$4 sm:$0xff]  }
 0x1f5   :  { %3703 = vmatprep.subr.bf16.mxu0 %v5015_v50  ;;  %v5081_v50 = vld [vmem:[#allocation6 + $0x5c4] ss:$28 sps:$4 sm:$0xff]  }
 0x1f7   :  { %3622 = vmatpush1.bf16.msra.mxu1 %v5010_v52  ;;  %v5076_v52 = vld [vmem:[#allocation6 + $0xcb8] ss:$28 sps:$4 sm:$0xff]  }
 0x1f8   :  { %3704 = vmatpush1.bf16.msra.mxu0 %v5013_v53  ;;  %3632 = vmatprep.subr.bf16.mxu1 %v5018_v54  ;;  %v5079_v53 = vld [vmem:[#allocation6 + $0x5c0] ss:$28 sps:$4 sm:$0xff]   ;;  %v5084_v54 = vld [vmem:[#allocation6 + $0xcf4] ss:$28 sps:$4 sm:$0xff]  }
 0x1f9   :  { %3714 = vmatprep.subr.bf16.mxu0 %v5021_v55  ;;  %v5087_v55 = vld [vmem:[#allocation6 + $0x5fc] ss:$28 sps:$4 sm:$0xff]  }
 0x1fa   :  { %3624 = vmatmul.mubr.bf16.vlgmr.msra.gmra.mrb[12].mxu1 %v5525_v51 }
 0x1fb   :  { %3706 = vmatmul.mubr.bf16.vlgmr.msra.gmra.mrb[12].mxu0 %v5495_v37  ;;  %3633 = vmatpush1.bf16.msra.mxu1 %v5016_v57  ;;  %v5082_v57 = vld [vmem:[#allocation6 + $0xcf0] ss:$28 sps:$4 sm:$0xff]  }
 0x1fc   :  { %3664 = vmatprep.mubr.bf16.mxu1 %v5528_v17  ;;  %3715 = vmatpush1.bf16.msra.mxu0 %v5019_v58  ;;  %v5085_v58 = vld [vmem:[#allocation6 + $0x5f8] ss:$28 sps:$4 sm:$0xff]  }
 0x1fd   :  { %3746 = vmatprep.mubr.bf16.mxu0 %v5497_v38  ;;  %3634 = vmatprep.subr.bf16.mxu1 %v5024_v60  ;;  %v5090_v60 = vld [vmem:[#allocation6 + $0xd2c] ss:$28 sps:$4 sm:$0xff]  }
 0x1fe   :  { %3716 = vmatprep.subr.bf16.mxu0 %v5027_v61  ;;  %v5093_v61 = vld [vmem:[#allocation6 + $0x634] ss:$28 sps:$4 sm:$0xff]  }
 0x1ff   :  { %3635 = vmatpush1.bf16.msra.mxu1 %v5022_v62  ;;  %v5088_v62 = vld [vmem:[#allocation6 + $0xd28] ss:$28 sps:$4 sm:$0xff]  }
 0x200   :  { %3717 = vmatpush1.bf16.msra.mxu0 %v5025_v63  ;;  %3636 = vmatprep.subr.bf16.mxu1 %v5030_v1  ;;  %v5091_v63 = vld [vmem:[#allocation6 + $0x630] ss:$28 sps:$4 sm:$0xff]   ;;  %v5096_v1 = vld [vmem:[#allocation6 + $0xd64] ss:$28 sps:$4 sm:$0xff]  }
 0x201   :  { %3718 = vmatprep.subr.bf16.mxu0 %v5033_v3  ;;  %v5099_v3 = vld [vmem:[#allocation6 + $0x66c] ss:$28 sps:$4 sm:$0xff]  }
 0x203   :  { %3637 = vmatpush1.bf16.msra.mxu1 %v5028_v4  ;;  %v5094_v4 = vld [vmem:[#allocation6 + $0xd60] ss:$28 sps:$4 sm:$0xff]  }
 0x204   :  { %3719 = vmatpush1.bf16.msra.mxu0 %v5031_v0  ;;  %3638 = vmatprep.subr.bf16.mxu1 %v5036_v5  ;;  %v5097_v0 = vld [vmem:[#allocation6 + $0x668] ss:$28 sps:$4 sm:$0xff]   ;;  %v5102_v5 = vld [vmem:[#allocation6 + $0xd9c] ss:$28 sps:$4 sm:$0xff]  }
 0x205   :  { %3720 = vmatprep.subr.bf16.mxu0 %v5039_v12  ;;  %v5105_v12 = vld [vmem:[#allocation6 + $0x6a4] ss:$28 sps:$4 sm:$0xff]  }
 0x207   :  { %3639 = vmatpush1.bf16.msra.mxu1 %v5034_v13  ;;  %v5100_v13 = vld [vmem:[#allocation6 + $0xd98] ss:$28 sps:$4 sm:$0xff]  }
 0x208   :  { %3721 = vmatpush1.bf16.msra.mxu0 %v5037_v14  ;;  %3640 = vmatprep.subr.bf16.mxu1 %v5042_v16  ;;  %v5103_v14 = vld [vmem:[#allocation6 + $0x6a0] ss:$28 sps:$4 sm:$0xff]   ;;  %v5108_v16 = vld [vmem:[#allocation6 + $0xdd4] ss:$28 sps:$4 sm:$0xff]  }
 0x209   :  { %3722 = vmatprep.subr.bf16.mxu0 %v5045_v59  ;;  %v5111_v59 = vld [vmem:[#allocation6 + $0x6dc] ss:$28 sps:$4 sm:$0xff]  }
 0x20b   :  { %3641 = vmatpush1.bf16.msra.mxu1 %v5040_v18  ;;  %v5106_v18 = vld [vmem:[#allocation6 + $0xdd0] ss:$28 sps:$4 sm:$0xff]  }
 0x20c   :  { %3723 = vmatpush1.bf16.msra.mxu0 %v5043_v19  ;;  %3642 = vmatprep.subr.bf16.mxu1 %v5048_v20  ;;  %v5109_v19 = vld [vmem:[#allocation6 + $0x6d8] ss:$28 sps:$4 sm:$0xff]  }
 0x20d   :  { %v5548_v25 = vpop.f32.mrb[8].mxu1  ;;  %3724 = vmatprep.subr.bf16.mxu0 %v5051_v21  ;;  %v5115_v20 = vld [vmem:[#allocation6 + $0x1d8] ss:$28 sps:$4 sm:$0xff]  }
 0x20e   :  { %v5550_v27 = vpop.f32.mrb[9].mxu1  ;;  %v5114_v21 = vld [vmem:[#allocation6 + $0x714] ss:$28 sps:$4 sm:$0xff]  }
 0x20f   :  { %3643 = vmatpush1.bf16.msra.mxu1 %v5046_v22  ;;  %v3383_v28 = vpop.f32.mrb[10].mxu1  ;;  %v5116_v22 = vld [vmem:[#allocation6 + $0x18] ss:$28 sps:$4 sm:$0xff]  }
 0x210   :  { %3725 = vmatpush1.bf16.msra.mxu0 %v5049_v23  ;;  %v3384_v30 = vpop.f32.mrb[11].mxu1  ;;  %3644 = vmatprep.subr.bf16.mxu1 %v5054_v24  ;;  %v5112_v23 = vld [vmem:[#allocation6 + $0x710] ss:$28 sps:$4 sm:$0xff]  }
 0x211   :  { %3726 = vmatprep.subr.bf16.mxu0 %v5057_v26  ;;  %v5119_v24 = vld [vmem:[#allocation6 + $0x74c] ss:$28 sps:$4 sm:$0xff]  }
 0x212   :  { %v5120_v26 = vld [vmem:[#allocation6 + $0x210] ss:$28 sps:$4 sm:$0xff]   ;;  %v5125_v30 = vld [vmem:[#allocation6 + $0x248] ss:$28 sps:$4 sm:$0xff]  }
 0x213   :  { %3645 = vmatpush1.bf16.msra.mxu1 %v5052_v29  ;;  %v5121_v28 = vld [vmem:[#allocation6 + $0x50] ss:$28 sps:$4 sm:$0xff]   ;;  %v5117_v29 = vld [vmem:[#allocation6 + $0x748] ss:$28 sps:$4 sm:$0xff]  }
 0x214   :  { %3727 = vmatpush1.bf16.msra.mxu0 %v5055_v7  ;;  %3646 = vmatprep.subr.bf16.mxu1 %v5060_v31  ;;  %v5124_v7 = vld [vmem:[#allocation6 + $0x784] ss:$28 sps:$4 sm:$0xff]  }
 0x215   :  { %3728 = vmatprep.subr.bf16.mxu0 %v5063_v32  ;;  %v5126_v31 = vld [vmem:[#allocation6 + $0x88] ss:$28 sps:$4 sm:$0xff]   ;;  %v5122_v32 = vld [vmem:[#allocation6 + $0x780] ss:$28 sps:$4 sm:$0xff]  }
 0x217   :  { %3647 = vmatpush1.bf16.msra.mxu1 %v5058_v56  ;;  %v5130_v56 = vld [vmem:[#allocation6 + $0x280] ss:$28 sps:$4 sm:$0xff]  }
 0x218   :  { %3729 = vmatpush1.bf16.msra.mxu0 %v5061_v36  ;;  %3648 = vmatprep.subr.bf16.mxu1 %v5066_v39  ;;  %v5129_v36 = vld [vmem:[#allocation6 + $0x7bc] ss:$28 sps:$4 sm:$0xff]  }
 0x219   :  { %3730 = vmatprep.subr.bf16.mxu0 %v5069_v40  ;;  %v5131_v39 = vld [vmem:[#allocation6 + $0xc0] ss:$28 sps:$4 sm:$0xff]   ;;  %v5127_v40 = vld [vmem:[#allocation6 + $0x7b8] ss:$28 sps:$4 sm:$0xff]  }
 0x21b   :  { %3649 = vmatpush1.bf16.msra.mxu1 %v5064_v41  ;;  %v5135_v41 = vld [vmem:[#allocation6 + $0x2b8] ss:$28 sps:$4 sm:$0xff]  }
 0x21c   :  { %3731 = vmatpush1.bf16.msra.mxu0 %v5067_v42  ;;  %3650 = vmatprep.subr.bf16.mxu1 %v5072_v44  ;;  %v5134_v42 = vld [vmem:[#allocation6 + $0x7f4] ss:$28 sps:$4 sm:$0xff]  }
 0x21d   :  { %3732 = vmatprep.subr.bf16.mxu0 %v5075_v46  ;;  %v5132_v44 = vld [vmem:[#allocation6 + $0x7f0] ss:$28 sps:$4 sm:$0xff]  }
 0x21e   :  { %v5140_v46 = vld [vmem:[#allocation6 + $0x2f0] ss:$28 sps:$4 sm:$0xff]  }
 0x21f   :  { %3651 = vmatpush1.bf16.msra.mxu1 %v5070_v47  ;;  %v5139_v47 = vld [vmem:[#allocation6 + $0x82c] ss:$28 sps:$4 sm:$0xff]  }
 0x220   :  { %3733 = vmatpush1.bf16.msra.mxu0 %v5073_v48  ;;  %3652 = vmatprep.subr.bf16.mxu1 %v5078_v49  ;;  %v5141_v48 = vld [vmem:[#allocation6 + $0x130] ss:$28 sps:$4 sm:$0xff]   ;;  %v5137_v49 = vld [vmem:[#allocation6 + $0x828] ss:$28 sps:$4 sm:$0xff]  }
 0x221   :  { %3734 = vmatprep.subr.bf16.mxu0 %v5081_v50  ;;  %v5145_v50 = vld [vmem:[#allocation6 + $0x328] ss:$28 sps:$4 sm:$0xff]  }
 0x223   :  { %3653 = vmatpush1.bf16.msra.mxu1 %v5076_v52  ;;  %v5144_v52 = vld [vmem:[#allocation6 + $0x864] ss:$28 sps:$4 sm:$0xff]  }
 0x224   :  { %3735 = vmatpush1.bf16.msra.mxu0 %v5079_v53  ;;  %3654 = vmatprep.subr.bf16.mxu1 %v5084_v54  ;;  %v5146_v53 = vld [vmem:[#allocation6 + $0x168] ss:$28 sps:$4 sm:$0xff]   ;;  %v5142_v54 = vld [vmem:[#allocation6 + $0x860] ss:$28 sps:$4 sm:$0xff]  }
 0x225   :  { %3736 = vmatprep.subr.bf16.mxu0 %v5087_v55  ;;  %v5150_v55 = vld [vmem:[#allocation6 + $0x360] ss:$28 sps:$4 sm:$0xff]  }
 0x227   :  { %3655 = vmatpush1.bf16.msra.mxu1 %v5082_v57  ;;  %v5149_v57 = vld [vmem:[#allocation6 + $0x89c] ss:$28 sps:$4 sm:$0xff]  }
 0x228   :  { %3737 = vmatpush1.bf16.msra.mxu0 %v5085_v58  ;;  %3656 = vmatprep.subr.bf16.mxu1 %v5090_v60  ;;  %v5151_v58 = vld [vmem:[#allocation6 + $0x1a0] ss:$28 sps:$4 sm:$0xff]   ;;  %v5147_v60 = vld [vmem:[#allocation6 + $0x898] ss:$28 sps:$4 sm:$0xff]  }
 0x229   :  { %3738 = vmatprep.subr.bf16.mxu0 %v5093_v61  ;;  %v5155_v61 = vld [vmem:[#allocation6 + $0x558] ss:$28 sps:$4 sm:$0xff]  }
 0x22b   :  { %3657 = vmatpush1.bf16.msra.mxu1 %v5088_v62  ;;  %v5154_v62 = vld [vmem:[#allocation6 + $0x8d4] ss:$28 sps:$4 sm:$0xff]  }
 0x22c   :  { %3739 = vmatpush1.bf16.msra.mxu0 %v5091_v63  ;;  %3658 = vmatprep.subr.bf16.mxu1 %v5096_v1  ;;  %v5156_v63 = vld [vmem:[#allocation6 + $0x398] ss:$28 sps:$4 sm:$0xff]   ;;  %v5152_v1 = vld [vmem:[#allocation6 + $0x8d0] ss:$28 sps:$4 sm:$0xff]  }
 0x22d   :  { %3740 = vmatprep.subr.bf16.mxu0 %v5099_v3  ;;  %v5160_v3 = vld [vmem:[#allocation6 + $0x590] ss:$28 sps:$4 sm:$0xff]  }
 0x22f   :  { %3659 = vmatpush1.bf16.msra.mxu1 %v5094_v4  ;;  %v5159_v4 = vld [vmem:[#allocation6 + $0x90c] ss:$28 sps:$4 sm:$0xff]  }
 0x230   :  { %3741 = vmatpush1.bf16.msra.mxu0 %v5097_v0  ;;  %3660 = vmatprep.subr.bf16.mxu1 %v5102_v5  ;;  %v5161_v0 = vld [vmem:[#allocation6 + $0x3d0] ss:$28 sps:$4 sm:$0xff]   ;;  %v5157_v5 = vld [vmem:[#allocation6 + $0x908] ss:$28 sps:$4 sm:$0xff]  }
 0x231   :  { %3742 = vmatprep.subr.bf16.mxu0 %v5105_v12  ;;  %v5165_v12 = vld [vmem:[#allocation6 + $0x5c8] ss:$28 sps:$4 sm:$0xff]  }
 0x233   :  { %3661 = vmatpush1.bf16.msra.mxu1 %v5100_v13  ;;  %v5164_v13 = vld [vmem:[#allocation6 + $0x944] ss:$28 sps:$4 sm:$0xff]  }
 0x234   :  { %3743 = vmatpush1.bf16.msra.mxu0 %v5103_v14  ;;  %3662 = vmatprep.subr.bf16.mxu1 %v5108_v16  ;;  %v5166_v14 = vld [vmem:[#allocation6 + $0x408] ss:$28 sps:$4 sm:$0xff]   ;;  %v5162_v16 = vld [vmem:[#allocation6 + $0x940] ss:$28 sps:$4 sm:$0xff]  }
 0x235   :  { %3744 = vmatprep.subr.bf16.mxu0 %v5111_v59  ;;  %v5170_v59 = vld [vmem:[#allocation6 + $0x600] ss:$28 sps:$4 sm:$0xff]  }
 0x237   :  { %3663 = vmatpush1.bf16.msra.mxu1 %v5106_v18  ;;  %v5169_v18 = vld [vmem:[#allocation6 + $0x97c] ss:$28 sps:$4 sm:$0xff]  }
 0x238   :  { %3745 = vmatpush1.bf16.msra.mxu0 %v5109_v19  ;;  %4495 = vmatprep.subr.bf16.mxu1 %v5115_v20  ;;  %v5167_v19 = vld [vmem:[#allocation6 + $0x978] ss:$28 sps:$4 sm:$0xff]  }
 0x239   :  { %3755 = vmatprep.subr.bf16.mxu0 %v5114_v21  ;;  %v5174_v20 = vld [vmem:[#allocation6 + $0x9b4] ss:$28 sps:$4 sm:$0xff]  }
 0x23a   :  { %3665 = vmatmul.mubr.bf16.vlgmr.msra.gmra.mrb[12].mxu1 %v5538_v33  ;;  %v5176_v21 = vld [vmem:[#allocation6 + $0x478] ss:$28 sps:$4 sm:$0xff]  }
 0x23b   :  { %3747 = vmatmul.mubr.bf16.vlgmr.msra.gmra.mrb[12].mxu0 %v5491_v34  ;;  %4496 = vmatpush3.bf16.msra.mxu1 %v5116_v22  ;;  %v5172_v22 = vld [vmem:[#allocation6 + $0x9b0] ss:$28 sps:$4 sm:$0xff]  }
 0x23c   :  { %3756 = vmatpush1.bf16.msra.mxu0 %v5112_v23  ;;  %3787 = vmatprep.mubr.bf16.mxu0 %v5514_v2  ;;  %v5180_v23 = vld [vmem:[#allocation6 + $0x670] ss:$28 sps:$4 sm:$0xff]  }
 0x23d   :  { %3869 = vmatprep.mubr.bf16.mxu1 %v5493_v35  ;;  %3757 = vmatprep.subr.bf16.mxu0 %v5119_v24  ;;  %v5136_v35 = vld [vmem:[#allocation6 + $0xf8] ss:$28 sps:$4 sm:$0xff]   ;;  %v5179_v24 = vld [vmem:[#allocation6 + $0x9ec] ss:$28 sps:$4 sm:$0xff]  }
 0x23e   :  { %4497 = vmatprep.subr.bf16.mxu1 %v5120_v26  ;;  %v5181_v26 = vld [vmem:[#allocation6 + $0x4b0] ss:$28 sps:$4 sm:$0xff]  }
 0x23f   :  { %4498 = vmatpush3.bf16.msra.mxu1 %v5121_v28  ;;  %v5177_v28 = vld [vmem:[#allocation6 + $0x9e8] ss:$28 sps:$4 sm:$0xff]  }
 0x240   :  { %3758 = vmatpush1.bf16.msra.mxu0 %v5117_v29  ;;  %4499 = vmatprep.subr.bf16.mxu1 %v5125_v30  ;;  %v5185_v29 = vld [vmem:[#allocation6 + $0x6a8] ss:$28 sps:$4 sm:$0xff]  }
 0x241   :  { %3759 = vmatprep.subr.bf16.mxu0 %v5124_v7  ;;  %v5184_v30 = vld [vmem:[#allocation6 + $0xa24] ss:$28 sps:$4 sm:$0xff]  }
 0x242   :  { %v5186_v7 = vld [vmem:[#allocation6 + $0x4e8] ss:$28 sps:$4 sm:$0xff]  }
 0x243   :  { %4500 = vmatpush3.bf16.msra.mxu1 %v5126_v31  ;;  %v5182_v31 = vld [vmem:[#allocation6 + $0xa20] ss:$28 sps:$4 sm:$0xff]  }
 0x244   :  { %3760 = vmatpush1.bf16.msra.mxu0 %v5122_v32  ;;  %4501 = vmatprep.subr.bf16.mxu1 %v5130_v56  ;;  %v5190_v32 = vld [vmem:[#allocation6 + $0x6e0] ss:$28 sps:$4 sm:$0xff]  }
 0x245   :  { %3761 = vmatprep.subr.bf16.mxu0 %v5129_v36  ;;  %v5189_v56 = vld [vmem:[#allocation6 + $0xa5c] ss:$28 sps:$4 sm:$0xff]  }
 0x246   :  { %v5191_v36 = vld [vmem:[#allocation6 + $0x520] ss:$28 sps:$4 sm:$0xff]  }
 0x247   :  { %4502 = vmatpush3.bf16.msra.mxu1 %v5131_v39  ;;  %v5187_v39 = vld [vmem:[#allocation6 + $0xa58] ss:$28 sps:$4 sm:$0xff]  }
 0x248   :  { %3762 = vmatpush1.bf16.msra.mxu0 %v5127_v40  ;;  %4503 = vmatprep.subr.bf16.mxu1 %v5135_v41  ;;  %v5195_v40 = vld [vmem:[#allocation6 + $0x8d8] ss:$28 sps:$4 sm:$0xff]  }
 0x249   :  { %3763 = vmatprep.subr.bf16.mxu0 %v5134_v42  ;;  %v5194_v41 = vld [vmem:[#allocation6 + $0xa94] ss:$28 sps:$4 sm:$0xff]  }
 0x24a   :  { %v5196_v42 = vld [vmem:[#allocation6 + $0x718] ss:$28 sps:$4 sm:$0xff]  }
 0x24b   :  { %4504 = vmatpush3.bf16.msra.mxu1 %v5136_v35  ;;  %v5192_v35 = vld [vmem:[#allocation6 + $0xa90] ss:$28 sps:$4 sm:$0xff]  }
 0x24c   :  { %3764 = vmatpush1.bf16.msra.mxu0 %v5132_v44  ;;  %4505 = vmatprep.subr.bf16.mxu1 %v5140_v46  ;;  %v5199_v44 = vld [vmem:[#allocation6 + $0xacc] ss:$28 sps:$4 sm:$0xff]  }
 0x24d   :  { %3765 = vmatprep.subr.bf16.mxu0 %v5139_v47  ;;  %v5200_v46 = vld [vmem:[#allocation6 + $0x910] ss:$28 sps:$4 sm:$0xff]  }
 0x24e   :  { %v5201_v47 = vld [vmem:[#allocation6 + $0x750] ss:$28 sps:$4 sm:$0xff]  }
 0x24f   :  { %4506 = vmatpush3.bf16.msra.mxu1 %v5141_v48  ;;  %v5197_v48 = vld [vmem:[#allocation6 + $0xac8] ss:$28 sps:$4 sm:$0xff]  }
 0x250   :  { %3766 = vmatpush1.bf16.msra.mxu0 %v5137_v49  ;;  %4507 = vmatprep.subr.bf16.mxu1 %v5145_v50  ;;  %v5205_v49 = vld [vmem:[#allocation6 + $0x948] ss:$28 sps:$4 sm:$0xff]  }
 0x251   :  { %3767 = vmatprep.subr.bf16.mxu0 %v5144_v52  ;;  %v5204_v50 = vld [vmem:[#allocation6 + $0xb04] ss:$28 sps:$4 sm:$0xff]  }
 0x252   :  { %v5206_v52 = vld [vmem:[#allocation6 + $0x788] ss:$28 sps:$4 sm:$0xff]  }
 0x253   :  { %4508 = vmatpush3.bf16.msra.mxu1 %v5146_v53  ;;  %v5202_v53 = vld [vmem:[#allocation6 + $0xb00] ss:$28 sps:$4 sm:$0xff]  }
 0x254   :  { %3768 = vmatpush1.bf16.msra.mxu0 %v5142_v54  ;;  %4509 = vmatprep.subr.bf16.mxu1 %v5150_v55  ;;  %v5209_v54 = vld [vmem:[#allocation6 + $0xb3c] ss:$28 sps:$4 sm:$0xff]  }
 0x255   :  { %3769 = vmatprep.subr.bf16.mxu0 %v5149_v57  ;;  %v5211_v55 = vld [vmem:[#allocation6 + $0x7c0] ss:$28 sps:$4 sm:$0xff]   ;;  %v5207_v57 = vld [vmem:[#allocation6 + $0xb38] ss:$28 sps:$4 sm:$0xff]  }
 0x257   :  { %4510 = vmatpush3.bf16.msra.mxu1 %v5151_v58  ;;  %v5215_v58 = vld [vmem:[#allocation6 + $0x9b8] ss:$28 sps:$4 sm:$0xff]  }
 0x258   :  { %3770 = vmatpush1.bf16.msra.mxu0 %v5147_v60  ;;  %4517 = vmatprep.subr.bf16.mxu1 %v5155_v61  ;;  %v5214_v60 = vld [vmem:[#allocation6 + $0xb74] ss:$28 sps:$4 sm:$0xff]  }
 0x259   :  { %3771 = vmatprep.subr.bf16.mxu0 %v5154_v62  ;;  %v5216_v61 = vld [vmem:[#allocation6 + $0x7f8] ss:$28 sps:$4 sm:$0xff]   ;;  %v5212_v62 = vld [vmem:[#allocation6 + $0xb70] ss:$28 sps:$4 sm:$0xff]  }
 0x25a   :  { %3870 = vmatmul.mubr.bf16.vlgmr.msra.gmra.mrb[16].mxu1 %v5495_v37  ;;  %v5171_v37 = vld [vmem:[#allocation6 + $0x440] ss:$28 sps:$4 sm:$0xff]  }
 0x25b   :  { %4518 = vmatpush3.bf16.msra.mxu1 %v5156_v63  ;;  %3909 = vmatprep.mubr.bf16.mxu1 %v5497_v38  ;;  %v5175_v38 = vld [vmem:[#allocation6 + $0x638] ss:$28 sps:$4 sm:$0xff]   ;;  %v5220_v63 = vld [vmem:[#allocation6 + $0x9f0] ss:$28 sps:$4 sm:$0xff]  }
 0x25c   :  { %3772 = vmatpush1.bf16.msra.mxu0 %v5152_v1  ;;  %4519 = vmatprep.subr.bf16.mxu1 %v5160_v3  ;;  %v5219_v3 = vld [vmem:[#allocation6 + $0xbac] ss:$28 sps:$4 sm:$0xff]  }
 0x25d   :  { %3773 = vmatprep.subr.bf16.mxu0 %v5159_v4 }
 0x25f   :  { %4520 = vmatpush3.bf16.msra.mxu1 %v5161_v0  ;;  %v5221_v0 = vld [vmem:[#allocation6 + $0x830] ss:$28 sps:$4 sm:$0xff]  }
 0x260   :  { %3774 = vmatpush1.bf16.msra.mxu0 %v5157_v5  ;;  %4521 = vmatprep.subr.bf16.mxu1 %v5165_v12  ;;  %v5217_v5 = vld [vmem:[#allocation6 + $0xba8] ss:$28 sps:$4 sm:$0xff]  }
 0x261   :  { %3775 = vmatprep.subr.bf16.mxu0 %v5164_v13  ;;  %v5225_v12 = vld [vmem:[#allocation6 + $0xa28] ss:$28 sps:$4 sm:$0xff]  }
 0x263   :  { %4522 = vmatpush3.bf16.msra.mxu1 %v5166_v14  ;;  %v5224_v14 = vld [vmem:[#allocation6 + $0xbe4] ss:$28 sps:$4 sm:$0xff]  }
 0x264   :  { %3776 = vmatpush1.bf16.msra.mxu0 %v5162_v16  ;;  %4523 = vmatprep.subr.bf16.mxu1 %v5170_v59 }
 0x265   :  { %3777 = vmatprep.subr.bf16.mxu0 %v5169_v18 }
 0x267   :  { %4524 = vmatpush3.bf16.msra.mxu1 %v5171_v37  ;;  %v5226_v37 = vld [vmem:[#allocation6 + $0x868] ss:$28 sps:$4 sm:$0xff]  }
 0x268   :  { %3778 = vmatpush1.bf16.msra.mxu0 %v5167_v19  ;;  %4525 = vmatprep.subr.bf16.mxu1 %v5175_v38 }
 0x269   :  { %3779 = vmatprep.subr.bf16.mxu0 %v5174_v20  ;;  %v5230_v20 = vld [vmem:[#allocation6 + $0xa60] ss:$28 sps:$4 sm:$0xff]  }
 0x26b   :  { %4526 = vmatpush3.bf16.msra.mxu1 %v5176_v21  ;;  %v5229_v21 = vld [vmem:[#allocation6 + $0xc1c] ss:$28 sps:$4 sm:$0xff]  }
 0x26c   :  { %3780 = vmatpush1.bf16.msra.mxu0 %v5172_v22  ;;  %4527 = vmatprep.subr.bf16.mxu1 %v5180_v23  ;;  %v5227_v22 = vld [vmem:[#allocation6 + $0xc18] ss:$28 sps:$4 sm:$0xff]  }
 0x26d   :  { %3781 = vmatprep.subr.bf16.mxu0 %v5179_v24  ;;  %v5235_v23 = vld [vmem:[#allocation6 + $0xc58] ss:$28 sps:$4 sm:$0xff]  }
 0x26e   :  { %v5234_v24 = vld [vmem:[#allocation6 + $0xc54] ss:$28 sps:$4 sm:$0xff]  }
 0x26f   :  { %4528 = vmatpush3.bf16.msra.mxu1 %v5181_v26  ;;  %v5236_v26 = vld [vmem:[#allocation6 + $0xa98] ss:$28 sps:$4 sm:$0xff]  }
 0x270   :  { %3782 = vmatpush1.bf16.msra.mxu0 %v5177_v28  ;;  %4529 = vmatprep.subr.bf16.mxu1 %v5185_v29  ;;  %v5232_v28 = vld [vmem:[#allocation6 + $0xc50] ss:$28 sps:$4 sm:$0xff]  }
 0x271   :  { %3783 = vmatprep.subr.bf16.mxu0 %v5184_v30  ;;  %v5240_v29 = vld [vmem:[#allocation6 + $0xc90] ss:$28 sps:$4 sm:$0xff]  }
 0x272   :  { %v5239_v30 = vld [vmem:[#allocation6 + $0xc8c] ss:$28 sps:$4 sm:$0xff]  }
 0x273   :  { %4530 = vmatpush3.bf16.msra.mxu1 %v5186_v7  ;;  %v5241_v7 = vld [vmem:[#allocation6 + $0xad0] ss:$28 sps:$4 sm:$0xff]  }
 0x274   :  { %3784 = vmatpush1.bf16.msra.mxu0 %v5182_v31  ;;  %4531 = vmatprep.subr.bf16.mxu1 %v5190_v32  ;;  %v5237_v31 = vld [vmem:[#allocation6 + $0xc88] ss:$28 sps:$4 sm:$0xff]  }
 0x275   :  { %3785 = vmatprep.subr.bf16.mxu0 %v5189_v56  ;;  %v5245_v32 = vld [vmem:[#allocation6 + $0xcc8] ss:$28 sps:$4 sm:$0xff]  }
 0x276   :  { %v5244_v56 = vld [vmem:[#allocation6 + $0xcc4] ss:$28 sps:$4 sm:$0xff]  }
 0x277   :  { %4532 = vmatpush3.bf16.msra.mxu1 %v5191_v36  ;;  %v5246_v36 = vld [vmem:[#allocation6 + $0xb08] ss:$28 sps:$4 sm:$0xff]  }
 0x278   :  { %3786 = vmatpush1.bf16.msra.mxu0 %v5187_v39  ;;  %4539 = vmatprep.subr.bf16.mxu1 %v5195_v40  ;;  %v5242_v39 = vld [vmem:[#allocation6 + $0xcc0] ss:$28 sps:$4 sm:$0xff]  }
 0x279   :  { %3796 = vmatprep.subr.bf16.mxu0 %v5194_v41  ;;  %v5250_v40 = vld [vmem:[#allocation6 + $0xd00] ss:$28 sps:$4 sm:$0xff]  }
 0x27a   :  { %3910 = vmatmul.mubr.bf16.vlgmr.msra.gmra.mrb[20].mxu1 %v5491_v34  ;;  %v5210_v34 = vld [vmem:[#allocation6 + $0x980] ss:$28 sps:$4 sm:$0xff]  }
 0x27b   :  { %3788 = vmatmul.mubr.bf16.vlgmr.msra.gmra.mrb[12].mxu0 %v5525_v51  ;;  %4540 = vmatpush3.bf16.msra.mxu1 %v5196_v42  ;;  %v5249_v41 = vld [vmem:[#allocation6 + $0xcfc] ss:$28 sps:$4 sm:$0xff]  }
 0x27c   :  { %3797 = vmatpush1.bf16.msra.mxu0 %v5192_v35  ;;  %3828 = vmatprep.mubr.bf16.mxu0 %v5528_v17  ;;  %v5247_v42 = vld [vmem:[#allocation6 + $0xcf8] ss:$28 sps:$4 sm:$0xff]  }
 0x27d   :  { %3949 = vmatprep.mubr.bf16.mxu1 %v5514_v2  ;;  %3798 = vmatprep.subr.bf16.mxu0 %v5199_v44  ;;  %v5562_v2 = vld [vmem:[#allocation7] sm:$0xff]  ;;  %v5254_v35 = vld [vmem:[#allocation6 + $0xd34] ss:$28 sps:$4 sm:$0xff]  }
 0x27e   :  { %4541 = vmatprep.subr.bf16.mxu1 %v5200_v46  ;;  %v1009_v1 = vrot.slane %v5562_v2, %v110_v8  ;;  %v1013_v4 = vrot.slane %v5562_v2, %v114_v9  ;;  %v5222_v9 = vld [vmem:[#allocation6 + $0xbe0] ss:$28 sps:$4 sm:$0xff]   ;;  %v5256_v44 = vld [vmem:[#allocation6 + $0xb78] ss:$28 sps:$4 sm:$0xff]   ;;  %v5252_v46 = vld [vmem:[#allocation6 + $0xd30] ss:$28 sps:$4 sm:$0xff]  }
 0x27f   :  { %4542 = vmatpush3.bf16.msra.mxu1 %v5201_v47  ;;  %v5260_v47 = vld [vmem:[#allocation6 + $0xd70] ss:$28 sps:$4 sm:$0xff]  }
 0x280   :  { %3799 = vmatpush1.bf16.msra.mxu0 %v5197_v48  ;;  %4543 = vmatprep.subr.bf16.mxu1 %v5205_v49  ;;  %v3380_v13 = vadd.f32 %v5548_v25, %v1009_v1  ;;  %v3382_v16 = vadd.f32 %v5550_v27, %v1013_v4  ;;  %v5231_v27 = vld [vmem:[#allocation6 + $0x8a0] ss:$28 sps:$4 sm:$0xff]   ;;  %v5259_v48 = vld [vmem:[#allocation6 + $0xd6c] ss:$28 sps:$4 sm:$0xff]  }
 0x281   :  { %3800 = vmatprep.subr.bf16.mxu0 %v5204_v50  ;;  %v5261_v49 = vld [vmem:[#allocation6 + $0xbb0] ss:$28 sps:$4 sm:$0xff]   ;;  %v5257_v50 = vld [vmem:[#allocation6 + $0xd68] ss:$28 sps:$4 sm:$0xff]  }
 0x283   :  { %4544 = vmatpush3.bf16.msra.mxu1 %v5206_v52  ;;  %v5265_v52 = vld [vmem:[#allocation6 + $0xda8] ss:$28 sps:$4 sm:$0xff]  }
 0x284   :  { %3801 = vmatpush1.bf16.msra.mxu0 %v5202_v53  ;;  %4545 = vmatprep.subr.bf16.mxu1 %v5210_v34  ;;  %v5264_v53 = vld [vmem:[#allocation6 + $0xda4] ss:$28 sps:$4 sm:$0xff]  }
 0x285   :  { %3802 = vmatprep.subr.bf16.mxu0 %v5209_v54  ;;  %v5266_v34 = vld [vmem:[#allocation6 + $0xbe8] ss:$28 sps:$4 sm:$0xff]   ;;  %v5262_v54 = vld [vmem:[#allocation6 + $0xda0] ss:$28 sps:$4 sm:$0xff]  }
 0x287   :  { %4546 = vmatpush3.bf16.msra.mxu1 %v5211_v55  ;;  %v5270_v55 = vld [vmem:[#allocation6 + $0xde0] ss:$28 sps:$4 sm:$0xff]  }
 0x288   :  { %3803 = vmatpush1.bf16.msra.mxu0 %v5207_v57  ;;  %4547 = vmatprep.subr.bf16.mxu1 %v5215_v58  ;;  %v5269_v57 = vld [vmem:[#allocation6 + $0xddc] ss:$28 sps:$4 sm:$0xff]  }
 0x289   :  { %3804 = vmatprep.subr.bf16.mxu0 %v5214_v60  ;;  %v5271_v58 = vld [vmem:[#allocation6 + $0xc20] ss:$28 sps:$4 sm:$0xff]   ;;  %v5267_v60 = vld [vmem:[#allocation6 + $0xdd8] ss:$28 sps:$4 sm:$0xff]  }
 0x28b   :  { %4548 = vmatpush3.bf16.msra.mxu1 %v5216_v61  ;;  %v1017_v61 = vrot.slane %v5562_v2, %v118_v10 }
 0x28c   :  { %3805 = vmatpush1.bf16.msra.mxu0 %v5212_v62  ;;  %4549 = vmatprep.subr.bf16.mxu1 %v5220_v63  ;;  %v1021_v62 = vrot.slane %v5562_v2, %v122_v11  ;;  %v1033_v11 = vrot.slane %v5562_v2, %v134_v15  ;;  %v1029_v15 = vrot.slane %v5562_v2, %v130_v43 }
 0x28d   :  { %3806 = vmatprep.subr.bf16.mxu0 %v5219_v3  ;;  %v3502_v59 = vpop.f32.mrb[8].mxu0 }
 0x28e   :  { %v4584_v8 = vadd.f32 %v3502_v59, %v3380_v13  ;;  %v3504_v18 = vpop.f32.mrb[9].mxu0 }
 0x28f   :  { %4550 = vmatpush3.bf16.msra.mxu1 %v5221_v0  ;;  %v4586_v19 = vadd.f32 %v3504_v18, %v3382_v16  ;;  %v3506_v38 = vpop.f32.mrb[10].mxu0 }
 0x290   :  { %3807 = vmatpush1.bf16.msra.mxu0 %v5217_v5  ;;  %4551 = vmatprep.subr.bf16.mxu1 %v5225_v12  ;;  %3997 = vst [vmem:[%s5617_s5] sm:$0xff] %v4584_v8  ;;  %v3507_v25 = vpop.f32.mrb[11].mxu0 }
 0x291   :  { %3808 = vmatprep.subr.bf16.mxu0 %v5224_v14  ;;  %3998 = vst [vmem:[%s5617_s5 + $0x8] sm:$0xff] %v4586_v19 }
 0x293   :  { %4552 = vmatpush3.bf16.msra.mxu1 %v5226_v37 }
 0x294   :  { %3809 = vmatpush1.bf16.msra.mxu0 %v5222_v9  ;;  %4553 = vmatprep.subr.bf16.mxu1 %v5230_v20 }
 0x295   :  { %3810 = vmatprep.subr.bf16.mxu0 %v5229_v21 }
 0x297   :  { %4554 = vmatpush3.bf16.msra.mxu1 %v5231_v27 }
 0x298   :  { %3811 = vmatpush1.bf16.msra.mxu0 %v5227_v22  ;;  %4561 = vmatprep.subr.bf16.mxu1 %v5235_v23  ;;  %v1025_v23 = vrot.slane %v5562_v2, %v126_v45 }
 0x299   :  { %3812 = vmatprep.subr.bf16.mxu0 %v5234_v24 }
 0x29a   :  { %3950 = vmatmul.mubr.bf16.vlgmr.msra.gmra.mrb[24].mxu1 %v5525_v51  ;;  %v5251_v51 = vld [vmem:[#allocation6 + $0xb40] ss:$28 sps:$4 sm:$0xff]  }
 0x29b   :  { %4562 = vmatpush3.bf16.msra.mxu1 %v5236_v26  ;;  %3989 = vmatprep.mubr.bf16.mxu1 %v5528_v17  ;;  %v5255_v17 = vld [vmem:[#allocation6 + $0xd38] ss:$28 sps:$4 sm:$0xff]  }
 0x29c   :  { %3813 = vmatpush1.bf16.msra.mxu0 %v5232_v28  ;;  %4563 = vmatprep.subr.bf16.mxu1 %v5240_v29 }
 0x29d   :  { %3814 = vmatprep.subr.bf16.mxu0 %v5239_v30 }
 0x29f   :  { %4564 = vmatpush3.bf16.msra.mxu1 %v5241_v7 }
 0x2a0   :  { %3815 = vmatpush1.bf16.msra.mxu0 %v5237_v31  ;;  %4565 = vmatprep.subr.bf16.mxu1 %v5245_v32 }
 0x2a1   :  { %3816 = vmatprep.subr.bf16.mxu0 %v5244_v56 }
 0x2a3   :  { %4566 = vmatpush3.bf16.msra.mxu1 %v5246_v36 }
 0x2a4   :  { %3817 = vmatpush1.bf16.msra.mxu0 %v5242_v39  ;;  %4567 = vmatprep.subr.bf16.mxu1 %v5250_v40 }
 0x2a5   :  { %3818 = vmatprep.subr.bf16.mxu0 %v5249_v41 }
 0x2a7   :  { %4568 = vmatpush3.bf16.msra.mxu1 %v5251_v51 }
 0x2a8   :  { %3819 = vmatpush1.bf16.msra.mxu0 %v5247_v42  ;;  %4569 = vmatprep.subr.bf16.mxu1 %v5255_v17 }
 0x2a9   :  { %3820 = vmatprep.subr.bf16.mxu0 %v5254_v35 }
 0x2ab   :  { %4570 = vmatpush3.bf16.msra.mxu1 %v5256_v44 }
 0x2ac   :  { %3821 = vmatpush1.bf16.msra.mxu0 %v5252_v46  ;;  %4571 = vmatprep.subr.bf16.mxu1 %v5260_v47 }
 0x2ad   :  { %3822 = vmatprep.subr.bf16.mxu0 %v5259_v48 }
 0x2af   :  { %4572 = vmatpush3.bf16.msra.mxu1 %v5261_v49 }
 0x2b0   :  { %3823 = vmatpush1.bf16.msra.mxu0 %v5257_v50  ;;  %4573 = vmatprep.subr.bf16.mxu1 %v5265_v52 }
 0x2b1   :  { %3824 = vmatprep.subr.bf16.mxu0 %v5264_v53 }
 0x2b3   :  { %4574 = vmatpush3.bf16.msra.mxu1 %v5266_v34 }
 0x2b4   :  { %3825 = vmatpush1.bf16.msra.mxu0 %v5262_v54  ;;  %4575 = vmatprep.subr.bf16.mxu1 %v5270_v55 }
 0x2b5   :  { %3826 = vmatprep.subr.bf16.mxu0 %v5269_v57 }
 0x2b7   :  { %4576 = vmatpush3.bf16.msra.mxu1 %v5271_v58 }
 0x2b8   :  { %3827 = vmatpush1.bf16.msra.mxu0 %v5267_v60 }
 0x2ba   :  { %3990 = vmatmul.mubr.bf16.vlgmr.msra.gmra.mrb[28].mxu1 %v5538_v33 }
 0x2bb   :  { %3829 = vmatmul.mubr.bf16.vlgmr.msra.gmra.mrb[12].mxu0 %v5538_v33 }
 0x30d   :  { %v3666_v63 = vpop.f32.mrb[12].mxu1 }
 0x30e   :  { %v4587_v1 = vadd.f32 %v3666_v63, %v1017_v61  ;;  %v3668_v3 = vpop.f32.mrb[13].mxu1 }
 0x30f   :  { %v4588_v4 = vadd.f32 %v3668_v3, %v1021_v62  ;;  %v3670_v0 = vpop.f32.mrb[14].mxu1 }
 0x310   :  { %3999 = vst [vmem:[%s5617_s5 + $0x10] sm:$0xff] %v4587_v1  ;;  %v3671_v5 = vpop.f32.mrb[15].mxu1 }
 0x311   :  { %4000 = vst [vmem:[%s5617_s5 + $0x18] sm:$0xff] %v4588_v4 }
 0x32d   :  { %v4511_v33 = vpop.f32.mrb[16].mxu1 }
 0x32e   :  { %v4512_v10 = vpop.f32.mrb[17].mxu1 }
 0x32f   :  { %v4513_v12 = vadd.f32 %v4512_v10, %v4511_v33  ;;  %v4514_v13 = vpop.f32.mrb[18].mxu1 }
 0x330   :  { %v4515_v14 = vpop.f32.mrb[19].mxu1 }
 0x331   :  { %v3872_v8 = vadd.f32 %v4513_v12, %v1033_v11 }
 0x34d   :  { %v4533_v16 = vpop.f32.mrb[20].mxu1 }
 0x34e   :  { %v4534_v59 = vpop.f32.mrb[21].mxu1 }
 0x34f   :  { %v4535_v18 = vadd.f32 %v4534_v59, %v4533_v16  ;;  %v4536_v37 = vpop.f32.mrb[22].mxu1 }
 0x350   :  { %v4537_v19 = vpop.f32.mrb[23].mxu1 }
 0x351   :  { %v3912_v38 = vadd.f32 %v4535_v18, %v3872_v8 }
 0x36d   :  { %v4555_v9 = vpop.f32.mrb[24].mxu1 }
 0x36e   :  { %v4556_v20 = vpop.f32.mrb[25].mxu1 }
 0x36f   :  { %v4557_v25 = vadd.f32 %v4556_v20, %v4555_v9  ;;  %v4558_v21 = vpop.f32.mrb[26].mxu1 }
 0x370   :  { %v4559_v27 = vpop.f32.mrb[27].mxu1 }
 0x371   :  { %v3952_v22 = vadd.f32 %v4557_v25, %v3912_v38 }
 0x38d   :  { %v4577_v24 = vpop.f32.mrb[28].mxu1 }
 0x38e   :  { %v3830_v26 = vpop.f32.mrb[12].mxu0  ;;  %v4578_v28 = vpop.f32.mrb[29].mxu1 }
 0x38f   :  { %v4589_v29 = vadd.f32 %v3830_v26, %v1025_v23  ;;  %v3832_v30 = vpop.f32.mrb[13].mxu0  ;;  %v4579_v7 = vadd.f32 %v4578_v28, %v4577_v24  ;;  %v4580_v31 = vpop.f32.mrb[30].mxu1 }
 0x390   :  { %v4590_v32 = vadd.f32 %v3832_v30, %v1029_v15  ;;  %v3834_v56 = vpop.f32.mrb[14].mxu0  ;;  %v4581_v36 = vpop.f32.mrb[31].mxu1 }
 0x391   :  { %4001 = vst [vmem:[%s5617_s5 + $0x20] sm:$0xff] %v4589_v29  ;;  %v3992_v39 = vadd.f32 %v4579_v7, %v3952_v22  ;;  %v3835_v45 = vpop.f32.mrb[15].mxu0 }
 0x392   :  { %4002 = vst [vmem:[%s5617_s5 + $0x28] sm:$0xff] %v4590_v32 }
 0x393   :  { %4003 = vst [vmem:[%s5617_s5 + $0x30] sm:$0xff] %v3992_v39 }
 0x394   :  { %4008 = vsyncpa [#allocation3], 1 }
 0x395   :  { %4009 = vsyncpa [#allocation5], 1 }
 0x396   :  { %4010 = vsyncpa [#allocation8], 1 }

</bundles_post_ra>
